<compile_context>
chip_gen: v7x
topology: tpu7x:2x2x1
jax: 0.10.0
libtpu: 0.0.40
codegen_flags: <defaults>
</compile_context>

<pallas_src>
import jax
import jax.numpy as jnp
from jax.experimental import pallas as pl
from jax.experimental.pallas import tpu as pltpu


def _make_conv_kernel(B, Cin, Cout, H, W, KH, KW):
    HW = H * W

    def kernel(x_ref, w_ref, b_ref, o_ref):
        # x_ref: (B*Cin, H*W)         VMEM f32  (channels on sublanes, spatial on lanes)
        # w_ref: (Cout*Cin*KH*KW,)    SMEM f32  (OIHW row-major, flattened)
        # b_ref: (Cout,)              SMEM f32
        # o_ref: (B*Cout, H*W)        VMEM f32  (lane-dense output slab)
        x = x_ref[...]                                     # single dense load of the slab

        acc = {}                                           # (b, co) -> (1, HW) f32
        for kh in range(KH):
            for kw in range(KW):
                s = kh * W + kw
                # tap[p] == x[p + s] for every valid output position p; the roll
                # wraparound only lands in the h >= Ho / w >= Wo region, which the
                # consumer discards.  One roll per tap for the whole slab (XLU).
                slab = x if s == 0 else pltpu.roll(x, shift=HW - s, axis=1)
                for b in range(B):
                    for ci in range(Cin):
                        r_in = b * Cin + ci
                        tap = slab[r_in:r_in + 1, :]       # (1, HW), static row slice
                        for co in range(Cout):
                            widx = ((co * Cin + ci) * KH + kh) * KW + kw
                            wv = w_ref[widx]               # SMEM scalar (hidden on scalar slots)
                            key = (b, co)
                            if key in acc:
                                acc[key] = acc[key] + tap * wv
                            else:
                                # init from first tap, bias folded in (no zeros + vadd)
                                acc[key] = tap * wv + b_ref[co]

        # Single dense (B*Cout, HW) store.
        o_ref[...] = jnp.concatenate(
            [acc[(b, co)] for b in range(B) for co in range(Cout)], axis=0)

    return kernel


def conv2d_pallas_full(x_nchw, w_oihw, bias):
    """Valid 3x3 conv; returns the FULL (B, Cout, H, W) slab.

    Only out[:, :, :H-KH+1, :W-KW+1] is valid — crop is left to the consumer
    (avoids a standalone tiny XLA slice op at this overhead-bound size).
    """
    B, Cin, H, W = x_nchw.shape
    Cout, Cin2, KH, KW = w_oihw.shape
    assert Cin2 == Cin
    HW = H * W

    # Free row-major reshapes — no transposes, no extra HBM traffic.
    x_flat = x_nchw.reshape(B * Cin, HW).astype(jnp.float32)
    w_flat = w_oihw.reshape(Cout * Cin * KH * KW).astype(jnp.float32)
    b_flat = bias.astype(jnp.float32)

    kernel = _make_conv_kernel(B, Cin, Cout, H, W, KH, KW)

    out_flat = pl.pallas_call(
        kernel,
        out_shape=jax.ShapeDtypeStruct((B * Cout, HW), jnp.float32),
        in_specs=[
            pl.BlockSpec(memory_space=pltpu.MemorySpace.VMEM),   # x slab (whole array)
            pl.BlockSpec(memory_space=pltpu.MemorySpace.SMEM),   # weights as scalars
            pl.BlockSpec(memory_space=pltpu.MemorySpace.SMEM),   # bias as scalars
        ],
        out_specs=pl.BlockSpec(memory_space=pltpu.MemorySpace.VMEM),
    )(x_flat, w_flat, b_flat)

    return out_flat.reshape(B, Cout, H, W)                  # free reshape


def conv2d_pallas(x_nchw, w_oihw, bias):
    """Conv2d(valid) semantics: (B, Cout, H-KH+1, W-KW+1).  The crop is the
    consumer-side slice fused into whatever jit program calls this."""
    B, Cin, H, W = x_nchw.shape
    Cout, _, KH, KW = w_oihw.shape
    Ho, Wo = H - KH + 1, W - KW + 1
    return conv2d_pallas_full(x_nchw, w_oihw, bias)[:, :, :Ho, :Wo]


def init_params(key):
    """Deterministic init matching PyTorch Conv2d default shapes/ranges."""
    Cout, Cin, KH, KW = 3, 3, 3, 3
    fan_in = Cin * KH * KW
    bound = 1.0 / jnp.sqrt(jnp.float32(fan_in))
    kw_key, kb_key = jax.random.split(key)
    w = jax.random.uniform(kw_key, (Cout, Cin, KH, KW),
                           minval=-bound, maxval=bound, dtype=jnp.float32)
    b = jax.random.uniform(kb_key, (Cout,),
                           minval=-bound, maxval=bound, dtype=jnp.float32)
    return w, b


if __name__ == "__main__":
    key = jax.random.PRNGKey(0)
    k_x, k_p = jax.random.split(key)

    # Shapes consistent with Conv2d(3, 3, kernel_size=3): NCHW input.
    x = jax.random.normal(k_x, (2, 3, 16, 16), dtype=jnp.float32)
    w, b = init_params(k_p)

    conv = jax.jit(conv2d_pallas)                 # kernel + consumer crop in one program
    out = jax.block_until_ready(conv(x, w, b))
    assert out.shape == (2, 3, 14, 14), out.shape

    # Sanity check against XLA's conv (same semantics as torch Conv2d valid conv).
    ref = jax.lax.conv_general_dilated(
        x, w, window_strides=(1, 1), padding="VALID",
        dimension_numbers=("NCHW", "OIHW", "NCHW")) + b[None, :, None, None]
    assert jnp.allclose(out, ref, atol=1e-5, rtol=1e-5), \
        float(jnp.max(jnp.abs(out - ref)))

    print("KERNEL_OK")
</pallas_src>

<mosaic_0001>
module attributes {stable_mosaic.version = 11 : i64} {
  func.func @kernel(%arg0: memref<6x256xf32, #tpu.memory_space<vmem>>, %arg1: memref<81xf32, #tpu.memory_space<smem>>, %arg2: memref<3xf32, #tpu.memory_space<smem>>, %arg3: memref<6x256xf32, #tpu.memory_space<vmem>>) attributes {dimension_semantics = [], scalar_prefetch = 0 : i64, scratch_operands = 0 : i64, tpu.core_type = #tpu.core_type<tc>} {
    %c0 = arith.constant 0 : index
    %c0_0 = arith.constant 0 : index
    %0 = vector.load %arg0[%c0, %c0_0] : memref<6x256xf32, #tpu.memory_space<vmem>>, vector<6x256xf32>
    %1 = vector.extract_strided_slice %0 {offsets = [0, 0], sizes = [1, 256], strides = [1, 1]} : vector<6x256xf32> to vector<1x256xf32>
    %c0_1 = arith.constant 0 : index
    %2 = memref.load %arg1[%c0_1] : memref<81xf32, #tpu.memory_space<smem>>
    %3 = vector.broadcast %2 : f32 to vector<1x256xf32>
    %4 = arith.mulf %1, %3 : vector<1x256xf32>
    %c0_2 = arith.constant 0 : index
    %5 = memref.load %arg2[%c0_2] : memref<3xf32, #tpu.memory_space<smem>>
    %6 = vector.broadcast %5 : f32 to vector<1x256xf32>
    %7 = arith.addf %4, %6 : vector<1x256xf32>
    %c27 = arith.constant 27 : index
    %8 = memref.load %arg1[%c27] : memref<81xf32, #tpu.memory_space<smem>>
    %9 = vector.broadcast %8 : f32 to vector<1x256xf32>
    %10 = arith.mulf %1, %9 : vector<1x256xf32>
    %c1 = arith.constant 1 : index
    %11 = memref.load %arg2[%c1] : memref<3xf32, #tpu.memory_space<smem>>
    %12 = vector.broadcast %11 : f32 to vector<1x256xf32>
    %13 = arith.addf %10, %12 : vector<1x256xf32>
    %c54 = arith.constant 54 : index
    %14 = memref.load %arg1[%c54] : memref<81xf32, #tpu.memory_space<smem>>
    %15 = vector.broadcast %14 : f32 to vector<1x256xf32>
    %16 = arith.mulf %1, %15 : vector<1x256xf32>
    %c2 = arith.constant 2 : index
    %17 = memref.load %arg2[%c2] : memref<3xf32, #tpu.memory_space<smem>>
    %18 = vector.broadcast %17 : f32 to vector<1x256xf32>
    %19 = arith.addf %16, %18 : vector<1x256xf32>
    %20 = vector.extract_strided_slice %0 {offsets = [1, 0], sizes = [1, 256], strides = [1, 1]} : vector<6x256xf32> to vector<1x256xf32>
    %c9 = arith.constant 9 : index
    %21 = memref.load %arg1[%c9] : memref<81xf32, #tpu.memory_space<smem>>
    %22 = vector.broadcast %21 : f32 to vector<1x256xf32>
    %23 = arith.mulf %20, %22 : vector<1x256xf32>
    %24 = arith.addf %7, %23 : vector<1x256xf32>
    %c36 = arith.constant 36 : index
    %25 = memref.load %arg1[%c36] : memref<81xf32, #tpu.memory_space<smem>>
    %26 = vector.broadcast %25 : f32 to vector<1x256xf32>
    %27 = arith.mulf %20, %26 : vector<1x256xf32>
    %28 = arith.addf %13, %27 : vector<1x256xf32>
    %c63 = arith.constant 63 : index
    %29 = memref.load %arg1[%c63] : memref<81xf32, #tpu.memory_space<smem>>
    %30 = vector.broadcast %29 : f32 to vector<1x256xf32>
    %31 = arith.mulf %20, %30 : vector<1x256xf32>
    %32 = arith.addf %19, %31 : vector<1x256xf32>
    %33 = vector.extract_strided_slice %0 {offsets = [2, 0], sizes = [1, 256], strides = [1, 1]} : vector<6x256xf32> to vector<1x256xf32>
    %c18 = arith.constant 18 : index
    %34 = memref.load %arg1[%c18] : memref<81xf32, #tpu.memory_space<smem>>
    %35 = vector.broadcast %34 : f32 to vector<1x256xf32>
    %36 = arith.mulf %33, %35 : vector<1x256xf32>
    %37 = arith.addf %24, %36 : vector<1x256xf32>
    %c45 = arith.constant 45 : index
    %38 = memref.load %arg1[%c45] : memref<81xf32, #tpu.memory_space<smem>>
    %39 = vector.broadcast %38 : f32 to vector<1x256xf32>
    %40 = arith.mulf %33, %39 : vector<1x256xf32>
    %41 = arith.addf %28, %40 : vector<1x256xf32>
    %c72 = arith.constant 72 : index
    %42 = memref.load %arg1[%c72] : memref<81xf32, #tpu.memory_space<smem>>
    %43 = vector.broadcast %42 : f32 to vector<1x256xf32>
    %44 = arith.mulf %33, %43 : vector<1x256xf32>
    %45 = arith.addf %32, %44 : vector<1x256xf32>
    %46 = vector.extract_strided_slice %0 {offsets = [3, 0], sizes = [1, 256], strides = [1, 1]} : vector<6x256xf32> to vector<1x256xf32>
    %c0_3 = arith.constant 0 : index
    %47 = memref.load %arg1[%c0_3] : memref<81xf32, #tpu.memory_space<smem>>
    %48 = vector.broadcast %47 : f32 to vector<1x256xf32>
    %49 = arith.mulf %46, %48 : vector<1x256xf32>
    %c0_4 = arith.constant 0 : index
    %50 = memref.load %arg2[%c0_4] : memref<3xf32, #tpu.memory_space<smem>>
    %51 = vector.broadcast %50 : f32 to vector<1x256xf32>
    %52 = arith.addf %49, %51 : vector<1x256xf32>
    %c27_5 = arith.constant 27 : index
    %53 = memref.load %arg1[%c27_5] : memref<81xf32, #tpu.memory_space<smem>>
    %54 = vector.broadcast %53 : f32 to vector<1x256xf32>
    %55 = arith.mulf %46, %54 : vector<1x256xf32>
    %c1_6 = arith.constant 1 : index
    %56 = memref.load %arg2[%c1_6] : memref<3xf32, #tpu.memory_space<smem>>
    %57 = vector.broadcast %56 : f32 to vector<1x256xf32>
    %58 = arith.addf %55, %57 : vector<1x256xf32>
    %c54_7 = arith.constant 54 : index
    %59 = memref.load %arg1[%c54_7] : memref<81xf32, #tpu.memory_space<smem>>
    %60 = vector.broadcast %59 : f32 to vector<1x256xf32>
    %61 = arith.mulf %46, %60 : vector<1x256xf32>
    %c2_8 = arith.constant 2 : index
    %62 = memref.load %arg2[%c2_8] : memref<3xf32, #tpu.memory_space<smem>>
    %63 = vector.broadcast %62 : f32 to vector<1x256xf32>
    %64 = arith.addf %61, %63 : vector<1x256xf32>
    %65 = vector.extract_strided_slice %0 {offsets = [4, 0], sizes = [1, 256], strides = [1, 1]} : vector<6x256xf32> to vector<1x256xf32>
    %c9_9 = arith.constant 9 : index
    %66 = memref.load %arg1[%c9_9] : memref<81xf32, #tpu.memory_space<smem>>
    %67 = vector.broadcast %66 : f32 to vector<1x256xf32>
    %68 = arith.mulf %65, %67 : vector<1x256xf32>
    %69 = arith.addf %52, %68 : vector<1x256xf32>
    %c36_10 = arith.constant 36 : index
    %70 = memref.load %arg1[%c36_10] : memref<81xf32, #tpu.memory_space<smem>>
    %71 = vector.broadcast %70 : f32 to vector<1x256xf32>
    %72 = arith.mulf %65, %71 : vector<1x256xf32>
    %73 = arith.addf %58, %72 : vector<1x256xf32>
    %c63_11 = arith.constant 63 : index
    %74 = memref.load %arg1[%c63_11] : memref<81xf32, #tpu.memory_space<smem>>
    %75 = vector.broadcast %74 : f32 to vector<1x256xf32>
    %76 = arith.mulf %65, %75 : vector<1x256xf32>
    %77 = arith.addf %64, %76 : vector<1x256xf32>
    %78 = vector.extract_strided_slice %0 {offsets = [5, 0], sizes = [1, 256], strides = [1, 1]} : vector<6x256xf32> to vector<1x256xf32>
    %c18_12 = arith.constant 18 : index
    %79 = memref.load %arg1[%c18_12] : memref<81xf32, #tpu.memory_space<smem>>
    %80 = vector.broadcast %79 : f32 to vector<1x256xf32>
    %81 = arith.mulf %78, %80 : vector<1x256xf32>
    %82 = arith.addf %69, %81 : vector<1x256xf32>
    %c45_13 = arith.constant 45 : index
    %83 = memref.load %arg1[%c45_13] : memref<81xf32, #tpu.memory_space<smem>>
    %84 = vector.broadcast %83 : f32 to vector<1x256xf32>
    %85 = arith.mulf %78, %84 : vector<1x256xf32>
    %86 = arith.addf %73, %85 : vector<1x256xf32>
    %c72_14 = arith.constant 72 : index
    %87 = memref.load %arg1[%c72_14] : memref<81xf32, #tpu.memory_space<smem>>
    %88 = vector.broadcast %87 : f32 to vector<1x256xf32>
    %89 = arith.mulf %78, %88 : vector<1x256xf32>
    %90 = arith.addf %77, %89 : vector<1x256xf32>
    %c255_i32 = arith.constant 255 : i32
    %91 = tpu.dynamic_rotate %0 by %c255_i32 dim 1 : vector<6x256xf32>, i32 -> vector<6x256xf32>
    %92 = vector.extract_strided_slice %91 {offsets = [0, 0], sizes = [1, 256], strides = [1, 1]} : vector<6x256xf32> to vector<1x256xf32>
    %c1_15 = arith.constant 1 : index
    %93 = memref.load %arg1[%c1_15] : memref<81xf32, #tpu.memory_space<smem>>
    %94 = vector.broadcast %93 : f32 to vector<1x256xf32>
    %95 = arith.mulf %92, %94 : vector<1x256xf32>
    %96 = arith.addf %37, %95 : vector<1x256xf32>
    %c28 = arith.constant 28 : index
    %97 = memref.load %arg1[%c28] : memref<81xf32, #tpu.memory_space<smem>>
    %98 = vector.broadcast %97 : f32 to vector<1x256xf32>
    %99 = arith.mulf %92, %98 : vector<1x256xf32>
    %100 = arith.addf %41, %99 : vector<1x256xf32>
    %c55 = arith.constant 55 : index
    %101 = memref.load %arg1[%c55] : memref<81xf32, #tpu.memory_space<smem>>
    %102 = vector.broadcast %101 : f32 to vector<1x256xf32>
    %103 = arith.mulf %92, %102 : vector<1x256xf32>
    %104 = arith.addf %45, %103 : vector<1x256xf32>
    %105 = vector.extract_strided_slice %91 {offsets = [1, 0], sizes = [1, 256], strides = [1, 1]} : vector<6x256xf32> to vector<1x256xf32>
    %c10 = arith.constant 10 : index
    %106 = memref.load %arg1[%c10] : memref<81xf32, #tpu.memory_space<smem>>
    %107 = vector.broadcast %106 : f32 to vector<1x256xf32>
    %108 = arith.mulf %105, %107 : vector<1x256xf32>
    %109 = arith.addf %96, %108 : vector<1x256xf32>
    %c37 = arith.constant 37 : index
    %110 = memref.load %arg1[%c37] : memref<81xf32, #tpu.memory_space<smem>>
    %111 = vector.broadcast %110 : f32 to vector<1x256xf32>
    %112 = arith.mulf %105, %111 : vector<1x256xf32>
    %113 = arith.addf %100, %112 : vector<1x256xf32>
    %c64 = arith.constant 64 : index
    %114 = memref.load %arg1[%c64] : memref<81xf32, #tpu.memory_space<smem>>
    %115 = vector.broadcast %114 : f32 to vector<1x256xf32>
    %116 = arith.mulf %105, %115 : vector<1x256xf32>
    %117 = arith.addf %104, %116 : vector<1x256xf32>
    %118 = vector.extract_strided_slice %91 {offsets = [2, 0], sizes = [1, 256], strides = [1, 1]} : vector<6x256xf32> to vector<1x256xf32>
    %c19 = arith.constant 19 : index
    %119 = memref.load %arg1[%c19] : memref<81xf32, #tpu.memory_space<smem>>
    %120 = vector.broadcast %119 : f32 to vector<1x256xf32>
    %121 = arith.mulf %118, %120 : vector<1x256xf32>
    %122 = arith.addf %109, %121 : vector<1x256xf32>
    %c46 = arith.constant 46 : index
    %123 = memref.load %arg1[%c46] : memref<81xf32, #tpu.memory_space<smem>>
    %124 = vector.broadcast %123 : f32 to vector<1x256xf32>
    %125 = arith.mulf %118, %124 : vector<1x256xf32>
    %126 = arith.addf %113, %125 : vector<1x256xf32>
    %c73 = arith.constant 73 : index
    %127 = memref.load %arg1[%c73] : memref<81xf32, #tpu.memory_space<smem>>
    %128 = vector.broadcast %127 : f32 to vector<1x256xf32>
    %129 = arith.mulf %118, %128 : vector<1x256xf32>
    %130 = arith.addf %117, %129 : vector<1x256xf32>
    %131 = vector.extract_strided_slice %91 {offsets = [3, 0], sizes = [1, 256], strides = [1, 1]} : vector<6x256xf32> to vector<1x256xf32>
    %c1_16 = arith.constant 1 : index
    %132 = memref.load %arg1[%c1_16] : memref<81xf32, #tpu.memory_space<smem>>
    %133 = vector.broadcast %132 : f32 to vector<1x256xf32>
    %134 = arith.mulf %131, %133 : vector<1x256xf32>
    %135 = arith.addf %82, %134 : vector<1x256xf32>
    %c28_17 = arith.constant 28 : index
    %136 = memref.load %arg1[%c28_17] : memref<81xf32, #tpu.memory_space<smem>>
    %137 = vector.broadcast %136 : f32 to vector<1x256xf32>
    %138 = arith.mulf %131, %137 : vector<1x256xf32>
    %139 = arith.addf %86, %138 : vector<1x256xf32>
    %c55_18 = arith.constant 55 : index
    %140 = memref.load %arg1[%c55_18] : memref<81xf32, #tpu.memory_space<smem>>
    %141 = vector.broadcast %140 : f32 to vector<1x256xf32>
    %142 = arith.mulf %131, %141 : vector<1x256xf32>
    %143 = arith.addf %90, %142 : vector<1x256xf32>
    %144 = vector.extract_strided_slice %91 {offsets = [4, 0], sizes = [1, 256], strides = [1, 1]} : vector<6x256xf32> to vector<1x256xf32>
    %c10_19 = arith.constant 10 : index
    %145 = memref.load %arg1[%c10_19] : memref<81xf32, #tpu.memory_space<smem>>
    %146 = vector.broadcast %145 : f32 to vector<1x256xf32>
    %147 = arith.mulf %144, %146 : vector<1x256xf32>
    %148 = arith.addf %135, %147 : vector<1x256xf32>
    %c37_20 = arith.constant 37 : index
    %149 = memref.load %arg1[%c37_20] : memref<81xf32, #tpu.memory_space<smem>>
    %150 = vector.broadcast %149 : f32 to vector<1x256xf32>
    %151 = arith.mulf %144, %150 : vector<1x256xf32>
    %152 = arith.addf %139, %151 : vector<1x256xf32>
    %c64_21 = arith.constant 64 : index
    %153 = memref.load %arg1[%c64_21] : memref<81xf32, #tpu.memory_space<smem>>
    %154 = vector.broadcast %153 : f32 to vector<1x256xf32>
    %155 = arith.mulf %144, %154 : vector<1x256xf32>
    %156 = arith.addf %143, %155 : vector<1x256xf32>
    %157 = vector.extract_strided_slice %91 {offsets = [5, 0], sizes = [1, 256], strides = [1, 1]} : vector<6x256xf32> to vector<1x256xf32>
    %c19_22 = arith.constant 19 : index
    %158 = memref.load %arg1[%c19_22] : memref<81xf32, #tpu.memory_space<smem>>
    %159 = vector.broadcast %158 : f32 to vector<1x256xf32>
    %160 = arith.mulf %157, %159 : vector<1x256xf32>
    %161 = arith.addf %148, %160 : vector<1x256xf32>
    %c46_23 = arith.constant 46 : index
    %162 = memref.load %arg1[%c46_23] : memref<81xf32, #tpu.memory_space<smem>>
    %163 = vector.broadcast %162 : f32 to vector<1x256xf32>
    %164 = arith.mulf %157, %163 : vector<1x256xf32>
    %165 = arith.addf %152, %164 : vector<1x256xf32>
    %c73_24 = arith.constant 73 : index
    %166 = memref.load %arg1[%c73_24] : memref<81xf32, #tpu.memory_space<smem>>
    %167 = vector.broadcast %166 : f32 to vector<1x256xf32>
    %168 = arith.mulf %157, %167 : vector<1x256xf32>
    %169 = arith.addf %156, %168 : vector<1x256xf32>
    %c254_i32 = arith.constant 254 : i32
    %170 = tpu.dynamic_rotate %0 by %c254_i32 dim 1 : vector<6x256xf32>, i32 -> vector<6x256xf32>
    %171 = vector.extract_strided_slice %170 {offsets = [0, 0], sizes = [1, 256], strides = [1, 1]} : vector<6x256xf32> to vector<1x256xf32>
    %c2_25 = arith.constant 2 : index
    %172 = memref.load %arg1[%c2_25] : memref<81xf32, #tpu.memory_space<smem>>
    %173 = vector.broadcast %172 : f32 to vector<1x256xf32>
    %174 = arith.mulf %171, %173 : vector<1x256xf32>
    %175 = arith.addf %122, %174 : vector<1x256xf32>
    %c29 = arith.constant 29 : index
    %176 = memref.load %arg1[%c29] : memref<81xf32, #tpu.memory_space<smem>>
    %177 = vector.broadcast %176 : f32 to vector<1x256xf32>
    %178 = arith.mulf %171, %177 : vector<1x256xf32>
    %179 = arith.addf %126, %178 : vector<1x256xf32>
    %c56 = arith.constant 56 : index
    %180 = memref.load %arg1[%c56] : memref<81xf32, #tpu.memory_space<smem>>
    %181 = vector.broadcast %180 : f32 to vector<1x256xf32>
    %182 = arith.mulf %171, %181 : vector<1x256xf32>
    %183 = arith.addf %130, %182 : vector<1x256xf32>
    %184 = vector.extract_strided_slice %170 {offsets = [1, 0], sizes = [1, 256], strides = [1, 1]} : vector<6x256xf32> to vector<1x256xf32>
    %c11 = arith.constant 11 : index
    %185 = memref.load %arg1[%c11] : memref<81xf32, #tpu.memory_space<smem>>
    %186 = vector.broadcast %185 : f32 to vector<1x256xf32>
    %187 = arith.mulf %184, %186 : vector<1x256xf32>
    %188 = arith.addf %175, %187 : vector<1x256xf32>
    %c38 = arith.constant 38 : index
    %189 = memref.load %arg1[%c38] : memref<81xf32, #tpu.memory_space<smem>>
    %190 = vector.broadcast %189 : f32 to vector<1x256xf32>
    %191 = arith.mulf %184, %190 : vector<1x256xf32>
    %192 = arith.addf %179, %191 : vector<1x256xf32>
    %c65 = arith.constant 65 : index
    %193 = memref.load %arg1[%c65] : memref<81xf32, #tpu.memory_space<smem>>
    %194 = vector.broadcast %193 : f32 to vector<1x256xf32>
    %195 = arith.mulf %184, %194 : vector<1x256xf32>
    %196 = arith.addf %183, %195 : vector<1x256xf32>
    %197 = vector.extract_strided_slice %170 {offsets = [2, 0], sizes = [1, 256], strides = [1, 1]} : vector<6x256xf32> to vector<1x256xf32>
    %c20 = arith.constant 20 : index
    %198 = memref.load %arg1[%c20] : memref<81xf32, #tpu.memory_space<smem>>
    %199 = vector.broadcast %198 : f32 to vector<1x256xf32>
    %200 = arith.mulf %197, %199 : vector<1x256xf32>
    %201 = arith.addf %188, %200 : vector<1x256xf32>
    %c47 = arith.constant 47 : index
    %202 = memref.load %arg1[%c47] : memref<81xf32, #tpu.memory_space<smem>>
    %203 = vector.broadcast %202 : f32 to vector<1x256xf32>
    %204 = arith.mulf %197, %203 : vector<1x256xf32>
    %205 = arith.addf %192, %204 : vector<1x256xf32>
    %c74 = arith.constant 74 : index
    %206 = memref.load %arg1[%c74] : memref<81xf32, #tpu.memory_space<smem>>
    %207 = vector.broadcast %206 : f32 to vector<1x256xf32>
    %208 = arith.mulf %197, %207 : vector<1x256xf32>
    %209 = arith.addf %196, %208 : vector<1x256xf32>
    %210 = vector.extract_strided_slice %170 {offsets = [3, 0], sizes = [1, 256], strides = [1, 1]} : vector<6x256xf32> to vector<1x256xf32>
    %c2_26 = arith.constant 2 : index
    %211 = memref.load %arg1[%c2_26] : memref<81xf32, #tpu.memory_space<smem>>
    %212 = vector.broadcast %211 : f32 to vector<1x256xf32>
    %213 = arith.mulf %210, %212 : vector<1x256xf32>
    %214 = arith.addf %161, %213 : vector<1x256xf32>
    %c29_27 = arith.constant 29 : index
    %215 = memref.load %arg1[%c29_27] : memref<81xf32, #tpu.memory_space<smem>>
    %216 = vector.broadcast %215 : f32 to vector<1x256xf32>
    %217 = arith.mulf %210, %216 : vector<1x256xf32>
    %218 = arith.addf %165, %217 : vector<1x256xf32>
    %c56_28 = arith.constant 56 : index
    %219 = memref.load %arg1[%c56_28] : memref<81xf32, #tpu.memory_space<smem>>
    %220 = vector.broadcast %219 : f32 to vector<1x256xf32>
    %221 = arith.mulf %210, %220 : vector<1x256xf32>
    %222 = arith.addf %169, %221 : vector<1x256xf32>
    %223 = vector.extract_strided_slice %170 {offsets = [4, 0], sizes = [1, 256], strides = [1, 1]} : vector<6x256xf32> to vector<1x256xf32>
    %c11_29 = arith.constant 11 : index
    %224 = memref.load %arg1[%c11_29] : memref<81xf32, #tpu.memory_space<smem>>
    %225 = vector.broadcast %224 : f32 to vector<1x256xf32>
    %226 = arith.mulf %223, %225 : vector<1x256xf32>
    %227 = arith.addf %214, %226 : vector<1x256xf32>
    %c38_30 = arith.constant 38 : index
    %228 = memref.load %arg1[%c38_30] : memref<81xf32, #tpu.memory_space<smem>>
    %229 = vector.broadcast %228 : f32 to vector<1x256xf32>
    %230 = arith.mulf %223, %229 : vector<1x256xf32>
    %231 = arith.addf %218, %230 : vector<1x256xf32>
    %c65_31 = arith.constant 65 : index
    %232 = memref.load %arg1[%c65_31] : memref<81xf32, #tpu.memory_space<smem>>
    %233 = vector.broadcast %232 : f32 to vector<1x256xf32>
    %234 = arith.mulf %223, %233 : vector<1x256xf32>
    %235 = arith.addf %222, %234 : vector<1x256xf32>
    %236 = vector.extract_strided_slice %170 {offsets = [5, 0], sizes = [1, 256], strides = [1, 1]} : vector<6x256xf32> to vector<1x256xf32>
    %c20_32 = arith.constant 20 : index
    %237 = memref.load %arg1[%c20_32] : memref<81xf32, #tpu.memory_space<smem>>
    %238 = vector.broadcast %237 : f32 to vector<1x256xf32>
    %239 = arith.mulf %236, %238 : vector<1x256xf32>
    %240 = arith.addf %227, %239 : vector<1x256xf32>
    %c47_33 = arith.constant 47 : index
    %241 = memref.load %arg1[%c47_33] : memref<81xf32, #tpu.memory_space<smem>>
    %242 = vector.broadcast %241 : f32 to vector<1x256xf32>
    %243 = arith.mulf %236, %242 : vector<1x256xf32>
    %244 = arith.addf %231, %243 : vector<1x256xf32>
    %c74_34 = arith.constant 74 : index
    %245 = memref.load %arg1[%c74_34] : memref<81xf32, #tpu.memory_space<smem>>
    %246 = vector.broadcast %245 : f32 to vector<1x256xf32>
    %247 = arith.mulf %236, %246 : vector<1x256xf32>
    %248 = arith.addf %235, %247 : vector<1x256xf32>
    %c240_i32 = arith.constant 240 : i32
    %249 = tpu.dynamic_rotate %0 by %c240_i32 dim 1 : vector<6x256xf32>, i32 -> vector<6x256xf32>
    %250 = vector.extract_strided_slice %249 {offsets = [0, 0], sizes = [1, 256], strides = [1, 1]} : vector<6x256xf32> to vector<1x256xf32>
    %c3 = arith.constant 3 : index
    %251 = memref.load %arg1[%c3] : memref<81xf32, #tpu.memory_space<smem>>
    %252 = vector.broadcast %251 : f32 to vector<1x256xf32>
    %253 = arith.mulf %250, %252 : vector<1x256xf32>
    %254 = arith.addf %201, %253 : vector<1x256xf32>
    %c30 = arith.constant 30 : index
    %255 = memref.load %arg1[%c30] : memref<81xf32, #tpu.memory_space<smem>>
    %256 = vector.broadcast %255 : f32 to vector<1x256xf32>
    %257 = arith.mulf %250, %256 : vector<1x256xf32>
    %258 = arith.addf %205, %257 : vector<1x256xf32>
    %c57 = arith.constant 57 : index
    %259 = memref.load %arg1[%c57] : memref<81xf32, #tpu.memory_space<smem>>
    %260 = vector.broadcast %259 : f32 to vector<1x256xf32>
    %261 = arith.mulf %250, %260 : vector<1x256xf32>
    %262 = arith.addf %209, %261 : vector<1x256xf32>
    %263 = vector.extract_strided_slice %249 {offsets = [1, 0], sizes = [1, 256], strides = [1, 1]} : vector<6x256xf32> to vector<1x256xf32>
    %c12 = arith.constant 12 : index
    %264 = memref.load %arg1[%c12] : memref<81xf32, #tpu.memory_space<smem>>
    %265 = vector.broadcast %264 : f32 to vector<1x256xf32>
    %266 = arith.mulf %263, %265 : vector<1x256xf32>
    %267 = arith.addf %254, %266 : vector<1x256xf32>
    %c39 = arith.constant 39 : index
    %268 = memref.load %arg1[%c39] : memref<81xf32, #tpu.memory_space<smem>>
    %269 = vector.broadcast %268 : f32 to vector<1x256xf32>
    %270 = arith.mulf %263, %269 : vector<1x256xf32>
    %271 = arith.addf %258, %270 : vector<1x256xf32>
    %c66 = arith.constant 66 : index
    %272 = memref.load %arg1[%c66] : memref<81xf32, #tpu.memory_space<smem>>
    %273 = vector.broadcast %272 : f32 to vector<1x256xf32>
    %274 = arith.mulf %263, %273 : vector<1x256xf32>
    %275 = arith.addf %262, %274 : vector<1x256xf32>
    %276 = vector.extract_strided_slice %249 {offsets = [2, 0], sizes = [1, 256], strides = [1, 1]} : vector<6x256xf32> to vector<1x256xf32>
    %c21 = arith.constant 21 : index
    %277 = memref.load %arg1[%c21] : memref<81xf32, #tpu.memory_space<smem>>
    %278 = vector.broadcast %277 : f32 to vector<1x256xf32>
    %279 = arith.mulf %276, %278 : vector<1x256xf32>
    %280 = arith.addf %267, %279 : vector<1x256xf32>
    %c48 = arith.constant 48 : index
    %281 = memref.load %arg1[%c48] : memref<81xf32, #tpu.memory_space<smem>>
    %282 = vector.broadcast %281 : f32 to vector<1x256xf32>
    %283 = arith.mulf %276, %282 : vector<1x256xf32>
    %284 = arith.addf %271, %283 : vector<1x256xf32>
    %c75 = arith.constant 75 : index
    %285 = memref.load %arg1[%c75] : memref<81xf32, #tpu.memory_space<smem>>
    %286 = vector.broadcast %285 : f32 to vector<1x256xf32>
    %287 = arith.mulf %276, %286 : vector<1x256xf32>
    %288 = arith.addf %275, %287 : vector<1x256xf32>
    %289 = vector.extract_strided_slice %249 {offsets = [3, 0], sizes = [1, 256], strides = [1, 1]} : vector<6x256xf32> to vector<1x256xf32>
    %c3_35 = arith.constant 3 : index
    %290 = memref.load %arg1[%c3_35] : memref<81xf32, #tpu.memory_space<smem>>
    %291 = vector.broadcast %290 : f32 to vector<1x256xf32>
    %292 = arith.mulf %289, %291 : vector<1x256xf32>
    %293 = arith.addf %240, %292 : vector<1x256xf32>
    %c30_36 = arith.constant 30 : index
    %294 = memref.load %arg1[%c30_36] : memref<81xf32, #tpu.memory_space<smem>>
    %295 = vector.broadcast %294 : f32 to vector<1x256xf32>
    %296 = arith.mulf %289, %295 : vector<1x256xf32>
    %297 = arith.addf %244, %296 : vector<1x256xf32>
    %c57_37 = arith.constant 57 : index
    %298 = memref.load %arg1[%c57_37] : memref<81xf32, #tpu.memory_space<smem>>
    %299 = vector.broadcast %298 : f32 to vector<1x256xf32>
    %300 = arith.mulf %289, %299 : vector<1x256xf32>
    %301 = arith.addf %248, %300 : vector<1x256xf32>
    %302 = vector.extract_strided_slice %249 {offsets = [4, 0], sizes = [1, 256], strides = [1, 1]} : vector<6x256xf32> to vector<1x256xf32>
    %c12_38 = arith.constant 12 : index
    %303 = memref.load %arg1[%c12_38] : memref<81xf32, #tpu.memory_space<smem>>
    %304 = vector.broadcast %303 : f32 to vector<1x256xf32>
    %305 = arith.mulf %302, %304 : vector<1x256xf32>
    %306 = arith.addf %293, %305 : vector<1x256xf32>
    %c39_39 = arith.constant 39 : index
    %307 = memref.load %arg1[%c39_39] : memref<81xf32, #tpu.memory_space<smem>>
    %308 = vector.broadcast %307 : f32 to vector<1x256xf32>
    %309 = arith.mulf %302, %308 : vector<1x256xf32>
    %310 = arith.addf %297, %309 : vector<1x256xf32>
    %c66_40 = arith.constant 66 : index
    %311 = memref.load %arg1[%c66_40] : memref<81xf32, #tpu.memory_space<smem>>
    %312 = vector.broadcast %311 : f32 to vector<1x256xf32>
    %313 = arith.mulf %302, %312 : vector<1x256xf32>
    %314 = arith.addf %301, %313 : vector<1x256xf32>
    %315 = vector.extract_strided_slice %249 {offsets = [5, 0], sizes = [1, 256], strides = [1, 1]} : vector<6x256xf32> to vector<1x256xf32>
    %c21_41 = arith.constant 21 : index
    %316 = memref.load %arg1[%c21_41] : memref<81xf32, #tpu.memory_space<smem>>
    %317 = vector.broadcast %316 : f32 to vector<1x256xf32>
    %318 = arith.mulf %315, %317 : vector<1x256xf32>
    %319 = arith.addf %306, %318 : vector<1x256xf32>
    %c48_42 = arith.constant 48 : index
    %320 = memref.load %arg1[%c48_42] : memref<81xf32, #tpu.memory_space<smem>>
    %321 = vector.broadcast %320 : f32 to vector<1x256xf32>
    %322 = arith.mulf %315, %321 : vector<1x256xf32>
    %323 = arith.addf %310, %322 : vector<1x256xf32>
    %c75_43 = arith.constant 75 : index
    %324 = memref.load %arg1[%c75_43] : memref<81xf32, #tpu.memory_space<smem>>
    %325 = vector.broadcast %324 : f32 to vector<1x256xf32>
    %326 = arith.mulf %315, %325 : vector<1x256xf32>
    %327 = arith.addf %314, %326 : vector<1x256xf32>
    %c239_i32 = arith.constant 239 : i32
    %328 = tpu.dynamic_rotate %0 by %c239_i32 dim 1 : vector<6x256xf32>, i32 -> vector<6x256xf32>
    %329 = vector.extract_strided_slice %328 {offsets = [0, 0], sizes = [1, 256], strides = [1, 1]} : vector<6x256xf32> to vector<1x256xf32>
    %c4 = arith.constant 4 : index
    %330 = memref.load %arg1[%c4] : memref<81xf32, #tpu.memory_space<smem>>
    %331 = vector.broadcast %330 : f32 to vector<1x256xf32>
    %332 = arith.mulf %329, %331 : vector<1x256xf32>
    %333 = arith.addf %280, %332 : vector<1x256xf32>
    %c31 = arith.constant 31 : index
    %334 = memref.load %arg1[%c31] : memref<81xf32, #tpu.memory_space<smem>>
    %335 = vector.broadcast %334 : f32 to vector<1x256xf32>
    %336 = arith.mulf %329, %335 : vector<1x256xf32>
    %337 = arith.addf %284, %336 : vector<1x256xf32>
    %c58 = arith.constant 58 : index
    %338 = memref.load %arg1[%c58] : memref<81xf32, #tpu.memory_space<smem>>
    %339 = vector.broadcast %338 : f32 to vector<1x256xf32>
    %340 = arith.mulf %329, %339 : vector<1x256xf32>
    %341 = arith.addf %288, %340 : vector<1x256xf32>
    %342 = vector.extract_strided_slice %328 {offsets = [1, 0], sizes = [1, 256], strides = [1, 1]} : vector<6x256xf32> to vector<1x256xf32>
    %c13 = arith.constant 13 : index
    %343 = memref.load %arg1[%c13] : memref<81xf32, #tpu.memory_space<smem>>
    %344 = vector.broadcast %343 : f32 to vector<1x256xf32>
    %345 = arith.mulf %342, %344 : vector<1x256xf32>
    %346 = arith.addf %333, %345 : vector<1x256xf32>
    %c40 = arith.constant 40 : index
    %347 = memref.load %arg1[%c40] : memref<81xf32, #tpu.memory_space<smem>>
    %348 = vector.broadcast %347 : f32 to vector<1x256xf32>
    %349 = arith.mulf %342, %348 : vector<1x256xf32>
    %350 = arith.addf %337, %349 : vector<1x256xf32>
    %c67 = arith.constant 67 : index
    %351 = memref.load %arg1[%c67] : memref<81xf32, #tpu.memory_space<smem>>
    %352 = vector.broadcast %351 : f32 to vector<1x256xf32>
    %353 = arith.mulf %342, %352 : vector<1x256xf32>
    %354 = arith.addf %341, %353 : vector<1x256xf32>
    %355 = vector.extract_strided_slice %328 {offsets = [2, 0], sizes = [1, 256], strides = [1, 1]} : vector<6x256xf32> to vector<1x256xf32>
    %c22 = arith.constant 22 : index
    %356 = memref.load %arg1[%c22] : memref<81xf32, #tpu.memory_space<smem>>
    %357 = vector.broadcast %356 : f32 to vector<1x256xf32>
    %358 = arith.mulf %355, %357 : vector<1x256xf32>
    %359 = arith.addf %346, %358 : vector<1x256xf32>
    %c49 = arith.constant 49 : index
    %360 = memref.load %arg1[%c49] : memref<81xf32, #tpu.memory_space<smem>>
    %361 = vector.broadcast %360 : f32 to vector<1x256xf32>
    %362 = arith.mulf %355, %361 : vector<1x256xf32>
    %363 = arith.addf %350, %362 : vector<1x256xf32>
    %c76 = arith.constant 76 : index
    %364 = memref.load %arg1[%c76] : memref<81xf32, #tpu.memory_space<smem>>
    %365 = vector.broadcast %364 : f32 to vector<1x256xf32>
    %366 = arith.mulf %355, %365 : vector<1x256xf32>
    %367 = arith.addf %354, %366 : vector<1x256xf32>
    %368 = vector.extract_strided_slice %328 {offsets = [3, 0], sizes = [1, 256], strides = [1, 1]} : vector<6x256xf32> to vector<1x256xf32>
    %c4_44 = arith.constant 4 : index
    %369 = memref.load %arg1[%c4_44] : memref<81xf32, #tpu.memory_space<smem>>
    %370 = vector.broadcast %369 : f32 to vector<1x256xf32>
    %371 = arith.mulf %368, %370 : vector<1x256xf32>
    %372 = arith.addf %319, %371 : vector<1x256xf32>
    %c31_45 = arith.constant 31 : index
    %373 = memref.load %arg1[%c31_45] : memref<81xf32, #tpu.memory_space<smem>>
    %374 = vector.broadcast %373 : f32 to vector<1x256xf32>
    %375 = arith.mulf %368, %374 : vector<1x256xf32>
    %376 = arith.addf %323, %375 : vector<1x256xf32>
    %c58_46 = arith.constant 58 : index
    %377 = memref.load %arg1[%c58_46] : memref<81xf32, #tpu.memory_space<smem>>
    %378 = vector.broadcast %377 : f32 to vector<1x256xf32>
    %379 = arith.mulf %368, %378 : vector<1x256xf32>
    %380 = arith.addf %327, %379 : vector<1x256xf32>
    %381 = vector.extract_strided_slice %328 {offsets = [4, 0], sizes = [1, 256], strides = [1, 1]} : vector<6x256xf32> to vector<1x256xf32>
    %c13_47 = arith.constant 13 : index
    %382 = memref.load %arg1[%c13_47] : memref<81xf32, #tpu.memory_space<smem>>
    %383 = vector.broadcast %382 : f32 to vector<1x256xf32>
    %384 = arith.mulf %381, %383 : vector<1x256xf32>
    %385 = arith.addf %372, %384 : vector<1x256xf32>
    %c40_48 = arith.constant 40 : index
    %386 = memref.load %arg1[%c40_48] : memref<81xf32, #tpu.memory_space<smem>>
    %387 = vector.broadcast %386 : f32 to vector<1x256xf32>
    %388 = arith.mulf %381, %387 : vector<1x256xf32>
    %389 = arith.addf %376, %388 : vector<1x256xf32>
    %c67_49 = arith.constant 67 : index
    %390 = memref.load %arg1[%c67_49] : memref<81xf32, #tpu.memory_space<smem>>
    %391 = vector.broadcast %390 : f32 to vector<1x256xf32>
    %392 = arith.mulf %381, %391 : vector<1x256xf32>
    %393 = arith.addf %380, %392 : vector<1x256xf32>
    %394 = vector.extract_strided_slice %328 {offsets = [5, 0], sizes = [1, 256], strides = [1, 1]} : vector<6x256xf32> to vector<1x256xf32>
    %c22_50 = arith.constant 22 : index
    %395 = memref.load %arg1[%c22_50] : memref<81xf32, #tpu.memory_space<smem>>
    %396 = vector.broadcast %395 : f32 to vector<1x256xf32>
    %397 = arith.mulf %394, %396 : vector<1x256xf32>
    %398 = arith.addf %385, %397 : vector<1x256xf32>
    %c49_51 = arith.constant 49 : index
    %399 = memref.load %arg1[%c49_51] : memref<81xf32, #tpu.memory_space<smem>>
    %400 = vector.broadcast %399 : f32 to vector<1x256xf32>
    %401 = arith.mulf %394, %400 : vector<1x256xf32>
    %402 = arith.addf %389, %401 : vector<1x256xf32>
    %c76_52 = arith.constant 76 : index
    %403 = memref.load %arg1[%c76_52] : memref<81xf32, #tpu.memory_space<smem>>
    %404 = vector.broadcast %403 : f32 to vector<1x256xf32>
    %405 = arith.mulf %394, %404 : vector<1x256xf32>
    %406 = arith.addf %393, %405 : vector<1x256xf32>
    %c238_i32 = arith.constant 238 : i32
    %407 = tpu.dynamic_rotate %0 by %c238_i32 dim 1 : vector<6x256xf32>, i32 -> vector<6x256xf32>
    %408 = vector.extract_strided_slice %407 {offsets = [0, 0], sizes = [1, 256], strides = [1, 1]} : vector<6x256xf32> to vector<1x256xf32>
    %c5 = arith.constant 5 : index
    %409 = memref.load %arg1[%c5] : memref<81xf32, #tpu.memory_space<smem>>
    %410 = vector.broadcast %409 : f32 to vector<1x256xf32>
    %411 = arith.mulf %408, %410 : vector<1x256xf32>
    %412 = arith.addf %359, %411 : vector<1x256xf32>
    %c32 = arith.constant 32 : index
    %413 = memref.load %arg1[%c32] : memref<81xf32, #tpu.memory_space<smem>>
    %414 = vector.broadcast %413 : f32 to vector<1x256xf32>
    %415 = arith.mulf %408, %414 : vector<1x256xf32>
    %416 = arith.addf %363, %415 : vector<1x256xf32>
    %c59 = arith.constant 59 : index
    %417 = memref.load %arg1[%c59] : memref<81xf32, #tpu.memory_space<smem>>
    %418 = vector.broadcast %417 : f32 to vector<1x256xf32>
    %419 = arith.mulf %408, %418 : vector<1x256xf32>
    %420 = arith.addf %367, %419 : vector<1x256xf32>
    %421 = vector.extract_strided_slice %407 {offsets = [1, 0], sizes = [1, 256], strides = [1, 1]} : vector<6x256xf32> to vector<1x256xf32>
    %c14 = arith.constant 14 : index
    %422 = memref.load %arg1[%c14] : memref<81xf32, #tpu.memory_space<smem>>
    %423 = vector.broadcast %422 : f32 to vector<1x256xf32>
    %424 = arith.mulf %421, %423 : vector<1x256xf32>
    %425 = arith.addf %412, %424 : vector<1x256xf32>
    %c41 = arith.constant 41 : index
    %426 = memref.load %arg1[%c41] : memref<81xf32, #tpu.memory_space<smem>>
    %427 = vector.broadcast %426 : f32 to vector<1x256xf32>
    %428 = arith.mulf %421, %427 : vector<1x256xf32>
    %429 = arith.addf %416, %428 : vector<1x256xf32>
    %c68 = arith.constant 68 : index
    %430 = memref.load %arg1[%c68] : memref<81xf32, #tpu.memory_space<smem>>
    %431 = vector.broadcast %430 : f32 to vector<1x256xf32>
    %432 = arith.mulf %421, %431 : vector<1x256xf32>
    %433 = arith.addf %420, %432 : vector<1x256xf32>
    %434 = vector.extract_strided_slice %407 {offsets = [2, 0], sizes = [1, 256], strides = [1, 1]} : vector<6x256xf32> to vector<1x256xf32>
    %c23 = arith.constant 23 : index
    %435 = memref.load %arg1[%c23] : memref<81xf32, #tpu.memory_space<smem>>
    %436 = vector.broadcast %435 : f32 to vector<1x256xf32>
    %437 = arith.mulf %434, %436 : vector<1x256xf32>
    %438 = arith.addf %425, %437 : vector<1x256xf32>
    %c50 = arith.constant 50 : index
    %439 = memref.load %arg1[%c50] : memref<81xf32, #tpu.memory_space<smem>>
    %440 = vector.broadcast %439 : f32 to vector<1x256xf32>
    %441 = arith.mulf %434, %440 : vector<1x256xf32>
    %442 = arith.addf %429, %441 : vector<1x256xf32>
    %c77 = arith.constant 77 : index
    %443 = memref.load %arg1[%c77] : memref<81xf32, #tpu.memory_space<smem>>
    %444 = vector.broadcast %443 : f32 to vector<1x256xf32>
    %445 = arith.mulf %434, %444 : vector<1x256xf32>
    %446 = arith.addf %433, %445 : vector<1x256xf32>
    %447 = vector.extract_strided_slice %407 {offsets = [3, 0], sizes = [1, 256], strides = [1, 1]} : vector<6x256xf32> to vector<1x256xf32>
    %c5_53 = arith.constant 5 : index
    %448 = memref.load %arg1[%c5_53] : memref<81xf32, #tpu.memory_space<smem>>
    %449 = vector.broadcast %448 : f32 to vector<1x256xf32>
    %450 = arith.mulf %447, %449 : vector<1x256xf32>
    %451 = arith.addf %398, %450 : vector<1x256xf32>
    %c32_54 = arith.constant 32 : index
    %452 = memref.load %arg1[%c32_54] : memref<81xf32, #tpu.memory_space<smem>>
    %453 = vector.broadcast %452 : f32 to vector<1x256xf32>
    %454 = arith.mulf %447, %453 : vector<1x256xf32>
    %455 = arith.addf %402, %454 : vector<1x256xf32>
    %c59_55 = arith.constant 59 : index
    %456 = memref.load %arg1[%c59_55] : memref<81xf32, #tpu.memory_space<smem>>
    %457 = vector.broadcast %456 : f32 to vector<1x256xf32>
    %458 = arith.mulf %447, %457 : vector<1x256xf32>
    %459 = arith.addf %406, %458 : vector<1x256xf32>
    %460 = vector.extract_strided_slice %407 {offsets = [4, 0], sizes = [1, 256], strides = [1, 1]} : vector<6x256xf32> to vector<1x256xf32>
    %c14_56 = arith.constant 14 : index
    %461 = memref.load %arg1[%c14_56] : memref<81xf32, #tpu.memory_space<smem>>
    %462 = vector.broadcast %461 : f32 to vector<1x256xf32>
    %463 = arith.mulf %460, %462 : vector<1x256xf32>
    %464 = arith.addf %451, %463 : vector<1x256xf32>
    %c41_57 = arith.constant 41 : index
    %465 = memref.load %arg1[%c41_57] : memref<81xf32, #tpu.memory_space<smem>>
    %466 = vector.broadcast %465 : f32 to vector<1x256xf32>
    %467 = arith.mulf %460, %466 : vector<1x256xf32>
    %468 = arith.addf %455, %467 : vector<1x256xf32>
    %c68_58 = arith.constant 68 : index
    %469 = memref.load %arg1[%c68_58] : memref<81xf32, #tpu.memory_space<smem>>
    %470 = vector.broadcast %469 : f32 to vector<1x256xf32>
    %471 = arith.mulf %460, %470 : vector<1x256xf32>
    %472 = arith.addf %459, %471 : vector<1x256xf32>
    %473 = vector.extract_strided_slice %407 {offsets = [5, 0], sizes = [1, 256], strides = [1, 1]} : vector<6x256xf32> to vector<1x256xf32>
    %c23_59 = arith.constant 23 : index
    %474 = memref.load %arg1[%c23_59] : memref<81xf32, #tpu.memory_space<smem>>
    %475 = vector.broadcast %474 : f32 to vector<1x256xf32>
    %476 = arith.mulf %473, %475 : vector<1x256xf32>
    %477 = arith.addf %464, %476 : vector<1x256xf32>
    %c50_60 = arith.constant 50 : index
    %478 = memref.load %arg1[%c50_60] : memref<81xf32, #tpu.memory_space<smem>>
    %479 = vector.broadcast %478 : f32 to vector<1x256xf32>
    %480 = arith.mulf %473, %479 : vector<1x256xf32>
    %481 = arith.addf %468, %480 : vector<1x256xf32>
    %c77_61 = arith.constant 77 : index
    %482 = memref.load %arg1[%c77_61] : memref<81xf32, #tpu.memory_space<smem>>
    %483 = vector.broadcast %482 : f32 to vector<1x256xf32>
    %484 = arith.mulf %473, %483 : vector<1x256xf32>
    %485 = arith.addf %472, %484 : vector<1x256xf32>
    %c224_i32 = arith.constant 224 : i32
    %486 = tpu.dynamic_rotate %0 by %c224_i32 dim 1 : vector<6x256xf32>, i32 -> vector<6x256xf32>
    %487 = vector.extract_strided_slice %486 {offsets = [0, 0], sizes = [1, 256], strides = [1, 1]} : vector<6x256xf32> to vector<1x256xf32>
    %c6 = arith.constant 6 : index
    %488 = memref.load %arg1[%c6] : memref<81xf32, #tpu.memory_space<smem>>
    %489 = vector.broadcast %488 : f32 to vector<1x256xf32>
    %490 = arith.mulf %487, %489 : vector<1x256xf32>
    %491 = arith.addf %438, %490 : vector<1x256xf32>
    %c33 = arith.constant 33 : index
    %492 = memref.load %arg1[%c33] : memref<81xf32, #tpu.memory_space<smem>>
    %493 = vector.broadcast %492 : f32 to vector<1x256xf32>
    %494 = arith.mulf %487, %493 : vector<1x256xf32>
    %495 = arith.addf %442, %494 : vector<1x256xf32>
    %c60 = arith.constant 60 : index
    %496 = memref.load %arg1[%c60] : memref<81xf32, #tpu.memory_space<smem>>
    %497 = vector.broadcast %496 : f32 to vector<1x256xf32>
    %498 = arith.mulf %487, %497 : vector<1x256xf32>
    %499 = arith.addf %446, %498 : vector<1x256xf32>
    %500 = vector.extract_strided_slice %486 {offsets = [1, 0], sizes = [1, 256], strides = [1, 1]} : vector<6x256xf32> to vector<1x256xf32>
    %c15 = arith.constant 15 : index
    %501 = memref.load %arg1[%c15] : memref<81xf32, #tpu.memory_space<smem>>
    %502 = vector.broadcast %501 : f32 to vector<1x256xf32>
    %503 = arith.mulf %500, %502 : vector<1x256xf32>
    %504 = arith.addf %491, %503 : vector<1x256xf32>
    %c42 = arith.constant 42 : index
    %505 = memref.load %arg1[%c42] : memref<81xf32, #tpu.memory_space<smem>>
    %506 = vector.broadcast %505 : f32 to vector<1x256xf32>
    %507 = arith.mulf %500, %506 : vector<1x256xf32>
    %508 = arith.addf %495, %507 : vector<1x256xf32>
    %c69 = arith.constant 69 : index
    %509 = memref.load %arg1[%c69] : memref<81xf32, #tpu.memory_space<smem>>
    %510 = vector.broadcast %509 : f32 to vector<1x256xf32>
    %511 = arith.mulf %500, %510 : vector<1x256xf32>
    %512 = arith.addf %499, %511 : vector<1x256xf32>
    %513 = vector.extract_strided_slice %486 {offsets = [2, 0], sizes = [1, 256], strides = [1, 1]} : vector<6x256xf32> to vector<1x256xf32>
    %c24 = arith.constant 24 : index
    %514 = memref.load %arg1[%c24] : memref<81xf32, #tpu.memory_space<smem>>
    %515 = vector.broadcast %514 : f32 to vector<1x256xf32>
    %516 = arith.mulf %513, %515 : vector<1x256xf32>
    %517 = arith.addf %504, %516 : vector<1x256xf32>
    %c51 = arith.constant 51 : index
    %518 = memref.load %arg1[%c51] : memref<81xf32, #tpu.memory_space<smem>>
    %519 = vector.broadcast %518 : f32 to vector<1x256xf32>
    %520 = arith.mulf %513, %519 : vector<1x256xf32>
    %521 = arith.addf %508, %520 : vector<1x256xf32>
    %c78 = arith.constant 78 : index
    %522 = memref.load %arg1[%c78] : memref<81xf32, #tpu.memory_space<smem>>
    %523 = vector.broadcast %522 : f32 to vector<1x256xf32>
    %524 = arith.mulf %513, %523 : vector<1x256xf32>
    %525 = arith.addf %512, %524 : vector<1x256xf32>
    %526 = vector.extract_strided_slice %486 {offsets = [3, 0], sizes = [1, 256], strides = [1, 1]} : vector<6x256xf32> to vector<1x256xf32>
    %c6_62 = arith.constant 6 : index
    %527 = memref.load %arg1[%c6_62] : memref<81xf32, #tpu.memory_space<smem>>
    %528 = vector.broadcast %527 : f32 to vector<1x256xf32>
    %529 = arith.mulf %526, %528 : vector<1x256xf32>
    %530 = arith.addf %477, %529 : vector<1x256xf32>
    %c33_63 = arith.constant 33 : index
    %531 = memref.load %arg1[%c33_63] : memref<81xf32, #tpu.memory_space<smem>>
    %532 = vector.broadcast %531 : f32 to vector<1x256xf32>
    %533 = arith.mulf %526, %532 : vector<1x256xf32>
    %534 = arith.addf %481, %533 : vector<1x256xf32>
    %c60_64 = arith.constant 60 : index
    %535 = memref.load %arg1[%c60_64] : memref<81xf32, #tpu.memory_space<smem>>
    %536 = vector.broadcast %535 : f32 to vector<1x256xf32>
    %537 = arith.mulf %526, %536 : vector<1x256xf32>
    %538 = arith.addf %485, %537 : vector<1x256xf32>
    %539 = vector.extract_strided_slice %486 {offsets = [4, 0], sizes = [1, 256], strides = [1, 1]} : vector<6x256xf32> to vector<1x256xf32>
    %c15_65 = arith.constant 15 : index
    %540 = memref.load %arg1[%c15_65] : memref<81xf32, #tpu.memory_space<smem>>
    %541 = vector.broadcast %540 : f32 to vector<1x256xf32>
    %542 = arith.mulf %539, %541 : vector<1x256xf32>
    %543 = arith.addf %530, %542 : vector<1x256xf32>
    %c42_66 = arith.constant 42 : index
    %544 = memref.load %arg1[%c42_66] : memref<81xf32, #tpu.memory_space<smem>>
    %545 = vector.broadcast %544 : f32 to vector<1x256xf32>
    %546 = arith.mulf %539, %545 : vector<1x256xf32>
    %547 = arith.addf %534, %546 : vector<1x256xf32>
    %c69_67 = arith.constant 69 : index
    %548 = memref.load %arg1[%c69_67] : memref<81xf32, #tpu.memory_space<smem>>
    %549 = vector.broadcast %548 : f32 to vector<1x256xf32>
    %550 = arith.mulf %539, %549 : vector<1x256xf32>
    %551 = arith.addf %538, %550 : vector<1x256xf32>
    %552 = vector.extract_strided_slice %486 {offsets = [5, 0], sizes = [1, 256], strides = [1, 1]} : vector<6x256xf32> to vector<1x256xf32>
    %c24_68 = arith.constant 24 : index
    %553 = memref.load %arg1[%c24_68] : memref<81xf32, #tpu.memory_space<smem>>
    %554 = vector.broadcast %553 : f32 to vector<1x256xf32>
    %555 = arith.mulf %552, %554 : vector<1x256xf32>
    %556 = arith.addf %543, %555 : vector<1x256xf32>
    %c51_69 = arith.constant 51 : index
    %557 = memref.load %arg1[%c51_69] : memref<81xf32, #tpu.memory_space<smem>>
    %558 = vector.broadcast %557 : f32 to vector<1x256xf32>
    %559 = arith.mulf %552, %558 : vector<1x256xf32>
    %560 = arith.addf %547, %559 : vector<1x256xf32>
    %c78_70 = arith.constant 78 : index
    %561 = memref.load %arg1[%c78_70] : memref<81xf32, #tpu.memory_space<smem>>
    %562 = vector.broadcast %561 : f32 to vector<1x256xf32>
    %563 = arith.mulf %552, %562 : vector<1x256xf32>
    %564 = arith.addf %551, %563 : vector<1x256xf32>
    %c223_i32 = arith.constant 223 : i32
    %565 = tpu.dynamic_rotate %0 by %c223_i32 dim 1 : vector<6x256xf32>, i32 -> vector<6x256xf32>
    %566 = vector.extract_strided_slice %565 {offsets = [0, 0], sizes = [1, 256], strides = [1, 1]} : vector<6x256xf32> to vector<1x256xf32>
    %c7 = arith.constant 7 : index
    %567 = memref.load %arg1[%c7] : memref<81xf32, #tpu.memory_space<smem>>
    %568 = vector.broadcast %567 : f32 to vector<1x256xf32>
    %569 = arith.mulf %566, %568 : vector<1x256xf32>
    %570 = arith.addf %517, %569 : vector<1x256xf32>
    %c34 = arith.constant 34 : index
    %571 = memref.load %arg1[%c34] : memref<81xf32, #tpu.memory_space<smem>>
    %572 = vector.broadcast %571 : f32 to vector<1x256xf32>
    %573 = arith.mulf %566, %572 : vector<1x256xf32>
    %574 = arith.addf %521, %573 : vector<1x256xf32>
    %c61 = arith.constant 61 : index
    %575 = memref.load %arg1[%c61] : memref<81xf32, #tpu.memory_space<smem>>
    %576 = vector.broadcast %575 : f32 to vector<1x256xf32>
    %577 = arith.mulf %566, %576 : vector<1x256xf32>
    %578 = arith.addf %525, %577 : vector<1x256xf32>
    %579 = vector.extract_strided_slice %565 {offsets = [1, 0], sizes = [1, 256], strides = [1, 1]} : vector<6x256xf32> to vector<1x256xf32>
    %c16 = arith.constant 16 : index
    %580 = memref.load %arg1[%c16] : memref<81xf32, #tpu.memory_space<smem>>
    %581 = vector.broadcast %580 : f32 to vector<1x256xf32>
    %582 = arith.mulf %579, %581 : vector<1x256xf32>
    %583 = arith.addf %570, %582 : vector<1x256xf32>
    %c43 = arith.constant 43 : index
    %584 = memref.load %arg1[%c43] : memref<81xf32, #tpu.memory_space<smem>>
    %585 = vector.broadcast %584 : f32 to vector<1x256xf32>
    %586 = arith.mulf %579, %585 : vector<1x256xf32>
    %587 = arith.addf %574, %586 : vector<1x256xf32>
    %c70 = arith.constant 70 : index
    %588 = memref.load %arg1[%c70] : memref<81xf32, #tpu.memory_space<smem>>
    %589 = vector.broadcast %588 : f32 to vector<1x256xf32>
    %590 = arith.mulf %579, %589 : vector<1x256xf32>
    %591 = arith.addf %578, %590 : vector<1x256xf32>
    %592 = vector.extract_strided_slice %565 {offsets = [2, 0], sizes = [1, 256], strides = [1, 1]} : vector<6x256xf32> to vector<1x256xf32>
    %c25 = arith.constant 25 : index
    %593 = memref.load %arg1[%c25] : memref<81xf32, #tpu.memory_space<smem>>
    %594 = vector.broadcast %593 : f32 to vector<1x256xf32>
    %595 = arith.mulf %592, %594 : vector<1x256xf32>
    %596 = arith.addf %583, %595 : vector<1x256xf32>
    %c52 = arith.constant 52 : index
    %597 = memref.load %arg1[%c52] : memref<81xf32, #tpu.memory_space<smem>>
    %598 = vector.broadcast %597 : f32 to vector<1x256xf32>
    %599 = arith.mulf %592, %598 : vector<1x256xf32>
    %600 = arith.addf %587, %599 : vector<1x256xf32>
    %c79 = arith.constant 79 : index
    %601 = memref.load %arg1[%c79] : memref<81xf32, #tpu.memory_space<smem>>
    %602 = vector.broadcast %601 : f32 to vector<1x256xf32>
    %603 = arith.mulf %592, %602 : vector<1x256xf32>
    %604 = arith.addf %591, %603 : vector<1x256xf32>
    %605 = vector.extract_strided_slice %565 {offsets = [3, 0], sizes = [1, 256], strides = [1, 1]} : vector<6x256xf32> to vector<1x256xf32>
    %c7_71 = arith.constant 7 : index
    %606 = memref.load %arg1[%c7_71] : memref<81xf32, #tpu.memory_space<smem>>
    %607 = vector.broadcast %606 : f32 to vector<1x256xf32>
    %608 = arith.mulf %605, %607 : vector<1x256xf32>
    %609 = arith.addf %556, %608 : vector<1x256xf32>
    %c34_72 = arith.constant 34 : index
    %610 = memref.load %arg1[%c34_72] : memref<81xf32, #tpu.memory_space<smem>>
    %611 = vector.broadcast %610 : f32 to vector<1x256xf32>
    %612 = arith.mulf %605, %611 : vector<1x256xf32>
    %613 = arith.addf %560, %612 : vector<1x256xf32>
    %c61_73 = arith.constant 61 : index
    %614 = memref.load %arg1[%c61_73] : memref<81xf32, #tpu.memory_space<smem>>
    %615 = vector.broadcast %614 : f32 to vector<1x256xf32>
    %616 = arith.mulf %605, %615 : vector<1x256xf32>
    %617 = arith.addf %564, %616 : vector<1x256xf32>
    %618 = vector.extract_strided_slice %565 {offsets = [4, 0], sizes = [1, 256], strides = [1, 1]} : vector<6x256xf32> to vector<1x256xf32>
    %c16_74 = arith.constant 16 : index
    %619 = memref.load %arg1[%c16_74] : memref<81xf32, #tpu.memory_space<smem>>
    %620 = vector.broadcast %619 : f32 to vector<1x256xf32>
    %621 = arith.mulf %618, %620 : vector<1x256xf32>
    %622 = arith.addf %609, %621 : vector<1x256xf32>
    %c43_75 = arith.constant 43 : index
    %623 = memref.load %arg1[%c43_75] : memref<81xf32, #tpu.memory_space<smem>>
    %624 = vector.broadcast %623 : f32 to vector<1x256xf32>
    %625 = arith.mulf %618, %624 : vector<1x256xf32>
    %626 = arith.addf %613, %625 : vector<1x256xf32>
    %c70_76 = arith.constant 70 : index
    %627 = memref.load %arg1[%c70_76] : memref<81xf32, #tpu.memory_space<smem>>
    %628 = vector.broadcast %627 : f32 to vector<1x256xf32>
    %629 = arith.mulf %618, %628 : vector<1x256xf32>
    %630 = arith.addf %617, %629 : vector<1x256xf32>
    %631 = vector.extract_strided_slice %565 {offsets = [5, 0], sizes = [1, 256], strides = [1, 1]} : vector<6x256xf32> to vector<1x256xf32>
    %c25_77 = arith.constant 25 : index
    %632 = memref.load %arg1[%c25_77] : memref<81xf32, #tpu.memory_space<smem>>
    %633 = vector.broadcast %632 : f32 to vector<1x256xf32>
    %634 = arith.mulf %631, %633 : vector<1x256xf32>
    %635 = arith.addf %622, %634 : vector<1x256xf32>
    %c52_78 = arith.constant 52 : index
    %636 = memref.load %arg1[%c52_78] : memref<81xf32, #tpu.memory_space<smem>>
    %637 = vector.broadcast %636 : f32 to vector<1x256xf32>
    %638 = arith.mulf %631, %637 : vector<1x256xf32>
    %639 = arith.addf %626, %638 : vector<1x256xf32>
    %c79_79 = arith.constant 79 : index
    %640 = memref.load %arg1[%c79_79] : memref<81xf32, #tpu.memory_space<smem>>
    %641 = vector.broadcast %640 : f32 to vector<1x256xf32>
    %642 = arith.mulf %631, %641 : vector<1x256xf32>
    %643 = arith.addf %630, %642 : vector<1x256xf32>
    %c222_i32 = arith.constant 222 : i32
    %644 = tpu.dynamic_rotate %0 by %c222_i32 dim 1 : vector<6x256xf32>, i32 -> vector<6x256xf32>
    %645 = vector.extract_strided_slice %644 {offsets = [0, 0], sizes = [1, 256], strides = [1, 1]} : vector<6x256xf32> to vector<1x256xf32>
    %c8 = arith.constant 8 : index
    %646 = memref.load %arg1[%c8] : memref<81xf32, #tpu.memory_space<smem>>
    %647 = vector.broadcast %646 : f32 to vector<1x256xf32>
    %648 = arith.mulf %645, %647 : vector<1x256xf32>
    %649 = arith.addf %596, %648 : vector<1x256xf32>
    %c35 = arith.constant 35 : index
    %650 = memref.load %arg1[%c35] : memref<81xf32, #tpu.memory_space<smem>>
    %651 = vector.broadcast %650 : f32 to vector<1x256xf32>
    %652 = arith.mulf %645, %651 : vector<1x256xf32>
    %653 = arith.addf %600, %652 : vector<1x256xf32>
    %c62 = arith.constant 62 : index
    %654 = memref.load %arg1[%c62] : memref<81xf32, #tpu.memory_space<smem>>
    %655 = vector.broadcast %654 : f32 to vector<1x256xf32>
    %656 = arith.mulf %645, %655 : vector<1x256xf32>
    %657 = arith.addf %604, %656 : vector<1x256xf32>
    %658 = vector.extract_strided_slice %644 {offsets = [1, 0], sizes = [1, 256], strides = [1, 1]} : vector<6x256xf32> to vector<1x256xf32>
    %c17 = arith.constant 17 : index
    %659 = memref.load %arg1[%c17] : memref<81xf32, #tpu.memory_space<smem>>
    %660 = vector.broadcast %659 : f32 to vector<1x256xf32>
    %661 = arith.mulf %658, %660 : vector<1x256xf32>
    %662 = arith.addf %649, %661 : vector<1x256xf32>
    %c44 = arith.constant 44 : index
    %663 = memref.load %arg1[%c44] : memref<81xf32, #tpu.memory_space<smem>>
    %664 = vector.broadcast %663 : f32 to vector<1x256xf32>
    %665 = arith.mulf %658, %664 : vector<1x256xf32>
    %666 = arith.addf %653, %665 : vector<1x256xf32>
    %c71 = arith.constant 71 : index
    %667 = memref.load %arg1[%c71] : memref<81xf32, #tpu.memory_space<smem>>
    %668 = vector.broadcast %667 : f32 to vector<1x256xf32>
    %669 = arith.mulf %658, %668 : vector<1x256xf32>
    %670 = arith.addf %657, %669 : vector<1x256xf32>
    %671 = vector.extract_strided_slice %644 {offsets = [2, 0], sizes = [1, 256], strides = [1, 1]} : vector<6x256xf32> to vector<1x256xf32>
    %c26 = arith.constant 26 : index
    %672 = memref.load %arg1[%c26] : memref<81xf32, #tpu.memory_space<smem>>
    %673 = vector.broadcast %672 : f32 to vector<1x256xf32>
    %674 = arith.mulf %671, %673 : vector<1x256xf32>
    %675 = arith.addf %662, %674 : vector<1x256xf32>
    %c53 = arith.constant 53 : index
    %676 = memref.load %arg1[%c53] : memref<81xf32, #tpu.memory_space<smem>>
    %677 = vector.broadcast %676 : f32 to vector<1x256xf32>
    %678 = arith.mulf %671, %677 : vector<1x256xf32>
    %679 = arith.addf %666, %678 : vector<1x256xf32>
    %c80 = arith.constant 80 : index
    %680 = memref.load %arg1[%c80] : memref<81xf32, #tpu.memory_space<smem>>
    %681 = vector.broadcast %680 : f32 to vector<1x256xf32>
    %682 = arith.mulf %671, %681 : vector<1x256xf32>
    %683 = arith.addf %670, %682 : vector<1x256xf32>
    %684 = vector.extract_strided_slice %644 {offsets = [3, 0], sizes = [1, 256], strides = [1, 1]} : vector<6x256xf32> to vector<1x256xf32>
    %c8_80 = arith.constant 8 : index
    %685 = memref.load %arg1[%c8_80] : memref<81xf32, #tpu.memory_space<smem>>
    %686 = vector.broadcast %685 : f32 to vector<1x256xf32>
    %687 = arith.mulf %684, %686 : vector<1x256xf32>
    %688 = arith.addf %635, %687 : vector<1x256xf32>
    %c35_81 = arith.constant 35 : index
    %689 = memref.load %arg1[%c35_81] : memref<81xf32, #tpu.memory_space<smem>>
    %690 = vector.broadcast %689 : f32 to vector<1x256xf32>
    %691 = arith.mulf %684, %690 : vector<1x256xf32>
    %692 = arith.addf %639, %691 : vector<1x256xf32>
    %c62_82 = arith.constant 62 : index
    %693 = memref.load %arg1[%c62_82] : memref<81xf32, #tpu.memory_space<smem>>
    %694 = vector.broadcast %693 : f32 to vector<1x256xf32>
    %695 = arith.mulf %684, %694 : vector<1x256xf32>
    %696 = arith.addf %643, %695 : vector<1x256xf32>
    %697 = vector.extract_strided_slice %644 {offsets = [4, 0], sizes = [1, 256], strides = [1, 1]} : vector<6x256xf32> to vector<1x256xf32>
    %c17_83 = arith.constant 17 : index
    %698 = memref.load %arg1[%c17_83] : memref<81xf32, #tpu.memory_space<smem>>
    %699 = vector.broadcast %698 : f32 to vector<1x256xf32>
    %700 = arith.mulf %697, %699 : vector<1x256xf32>
    %701 = arith.addf %688, %700 : vector<1x256xf32>
    %c44_84 = arith.constant 44 : index
    %702 = memref.load %arg1[%c44_84] : memref<81xf32, #tpu.memory_space<smem>>
    %703 = vector.broadcast %702 : f32 to vector<1x256xf32>
    %704 = arith.mulf %697, %703 : vector<1x256xf32>
    %705 = arith.addf %692, %704 : vector<1x256xf32>
    %c71_85 = arith.constant 71 : index
    %706 = memref.load %arg1[%c71_85] : memref<81xf32, #tpu.memory_space<smem>>
    %707 = vector.broadcast %706 : f32 to vector<1x256xf32>
    %708 = arith.mulf %697, %707 : vector<1x256xf32>
    %709 = arith.addf %696, %708 : vector<1x256xf32>
    %710 = vector.extract_strided_slice %644 {offsets = [5, 0], sizes = [1, 256], strides = [1, 1]} : vector<6x256xf32> to vector<1x256xf32>
    %c26_86 = arith.constant 26 : index
    %711 = memref.load %arg1[%c26_86] : memref<81xf32, #tpu.memory_space<smem>>
    %712 = vector.broadcast %711 : f32 to vector<1x256xf32>
    %713 = arith.mulf %710, %712 : vector<1x256xf32>
    %714 = arith.addf %701, %713 : vector<1x256xf32>
    %c53_87 = arith.constant 53 : index
    %715 = memref.load %arg1[%c53_87] : memref<81xf32, #tpu.memory_space<smem>>
    %716 = vector.broadcast %715 : f32 to vector<1x256xf32>
    %717 = arith.mulf %710, %716 : vector<1x256xf32>
    %718 = arith.addf %705, %717 : vector<1x256xf32>
    %c80_88 = arith.constant 80 : index
    %719 = memref.load %arg1[%c80_88] : memref<81xf32, #tpu.memory_space<smem>>
    %720 = vector.broadcast %719 : f32 to vector<1x256xf32>
    %721 = arith.mulf %710, %720 : vector<1x256xf32>
    %722 = arith.addf %709, %721 : vector<1x256xf32>
    %723 = tpu.concatenate %675, %679, %683, %714, %718, %722 in 0 : vector<1x256xf32>, vector<1x256xf32>, vector<1x256xf32>, vector<1x256xf32>, vector<1x256xf32>, vector<1x256xf32> -> vector<6x256xf32>
    %c0_89 = arith.constant 0 : index
    %c0_90 = arith.constant 0 : index
    %724 = vector.load %arg3[%c0_89, %c0_90] : memref<6x256xf32, #tpu.memory_space<vmem>>, vector<6x256xf32>
    tpu.vector_store %arg3[%c0_89, %c0_90], %723 {strides = array<i32>} : memref<6x256xf32, #tpu.memory_space<vmem>>, vector<6x256xf32>,
    return
  }
}

</mosaic_0001>

<bundles_post_ra>
// kernel: conv2d_pallas.1
= control target key start
LH: loop header
LB: loop body
LE: loop exit
PB: predicated region body
PF: predicated region fallthrough
CT: control target
= control target key end

     0   :  { %s1762_s0 = inlined_call_operand.vmem [shape: f32[6,256], index: 0, kind: input, shape index: {}]   ;;  %s1763_s1 = inlined_call_operand.vmem [shape: f32[81], index: 1, kind: input, shape index: {}]   ;;  %s1764_s2 = inlined_call_operand.vmem [shape: f32[3], index: 2, kind: input, shape index: {}]   ;;  %s1765_s3 = inlined_call_operand.vmem [shape: f32[6,256], index: 3, kind: output, shape index: {}]  }
   0x1   :  { %1856 = sst [smem:[#allocation61_spill]] %s1765_s3 }
   0x2   :  { %8 = vsyncpa [#allocation3], 0  ;;  %s18_s14 = sshll.u32 %s1763_s1, 4  ;;  %s19_s14 = int_to_ptr.vmem [resolvable:$true] %s18_s14 }
   0x3   :  { %9 = vsyncpa [#allocation5], 0  ;;  %s28_s17 = sshll.u32 %s1764_s2, 4  ;;  %s1042_s18 = scalar_lea.vmem %s19_s14, 16  ;;  %s29_s17 = int_to_ptr.vmem [resolvable:$true] %s28_s17 }
   0x4   :  { %p1043_p0 = scmp.ne.s32.totalorder %s19_s14, %s1042_s18  ;;  %p1047_p1 = scmp.lt.s32.totalorder %s19_s14, %s19_s14 }
   0x5   :  { %p1048_p2 = scmp.lt.s32.totalorder %s1042_s18, %s1042_s18 }
   0x7   :  { %p1049_p3 = por %p1048_p2, %p1047_p1 }
   0x9   :  { %p1050_p4 = pnand %p1049_p3, %p1043_p0 }
   0xb   :  { %1053 = shalt.err (!%p1050_p4)
}
   0xc   :  { %s1070_s19 = smov [#allocation2]   ;;  %s1054_s20 = scalar_lea.vmem %s29_s17, 16 }
   0xd   :  { %21 = dma.vmem_to_smem %s19_s14, 16, %s1070_s19, [#allocation3]  }
   0xe   :  { %p1055_p5 = scmp.ne.s32.totalorder %s29_s17, %s1054_s20  ;;  %p1059_p6 = scmp.lt.s32.totalorder %s29_s17, %s29_s17 }
   0xf   :  { %p1060_p7 = scmp.lt.s32.totalorder %s1054_s20, %s1054_s20 }
  0x11   :  { %p1061_p8 = por %p1060_p7, %p1059_p6 }
  0x13   :  { %p1062_p9 = pnand %p1061_p8, %p1055_p5 }
  0x15   :  { %1065 = shalt.err (!%p1062_p9)
}
  0x16   :  { %s1071_s1 = smov [#allocation4]  }
  0x17   :  { %31 = dma.vmem_to_smem %s29_s17, 16, %s1071_s1, [#allocation5]  }
  0x18   :  { %1066 = dma.done.wait [#allocation3], 16  }
  0x19   :  { %1067 = vsyncadd [#allocation3], 4294967280 }
  0x1a   :  { %1068 = dma.done.wait [#allocation5], 16  }
  0x1b   :  { %1069 = vsyncadd [#allocation5], 4294967280 }
  0x1c   :  { %38 = sfence }
  0x1d   :  { %v1109_v0 = vld [vmem:[%s1762_s0] sm:$0x3f]  ;;  %s1072_s22 = smov 127   ;;  %s1073_s23 = smov 126   ;;  %v1116_v1 = vld [vmem:[%s1762_s0 + $0x8] sm:$0x3f]  ;;  %v141_v30 = vlaneseq }
  0x1e   :  { %137 = vrot.lane.b32.xlu0 %v1109_v0, %s1072_s22  ;;  %236 = vrot.lane.b32.xlu1 %v1109_v0, %s1073_s23  ;;  %s1074_s26 = smov 112   ;;  %s1075_s27 = smov 111   ;;  %vm927_vm8 = vcmask 1040384   ;;  %vm930_vm9 = vcmask 1041408   ;;  %vm933_vm10 = vcmask 1042432   ;;  %vm936_vm11 = vcmask 1043456  }
  0x1f   :  { %s1076_s28 = smov 110   ;;  %s1077_s0 = smov 96   ;;  %v1270_v50 = vand.u32 127, %v141_v30  ;;  %vm939_vm12 = vcmask 1044480  }
  0x20   :  { %s1078_s29 = smov 95   ;;  %s1079_s30 = smov 94  }
  0x21   :  { %s1132_s4 = sld [smem:[#allocation2]]  ;;  %s1136_s6 = sld [smem:[#allocation2 + $0x1b]]  ;;  %vm143_vm0 = vcmp.lt.s32.totalorder %v1270_v50, 127  ;;  %vm240_vm1 = vcmp.lt.s32.totalorder %v1270_v50, 126  ;;  %vm337_vm2 = vcmp.lt.s32.totalorder %v1270_v50, 112  ;;  %vm434_vm3 = vcmp.lt.s32.totalorder %v1270_v50, 111 }
  0x22   :  { %139 = vrot.lane.b32.xlu0 %v1116_v1, %s1072_s22  ;;  %238 = vrot.lane.b32.xlu1 %v1116_v1, %s1073_s23  ;;  %s1134_s5 = sld [smem:[#allocation4]]  ;;  %s1138_s7 = sld [smem:[#allocation4 + $0x1]]  ;;  %vm531_vm4 = vcmp.lt.s32.totalorder %v1270_v50, 110  ;;  %vm628_vm5 = vcmp.lt.s32.totalorder %v1270_v50, 96  ;;  %vm725_vm6 = vcmp.lt.s32.totalorder %v1270_v50, 95  ;;  %vm822_vm7 = vcmp.lt.s32.totalorder %v1270_v50, 94 }
  0x23   :  { %s1140_s8 = sld [smem:[#allocation2 + $0x36]]  ;;  %s1142_s9 = sld [smem:[#allocation4 + $0x2]] }
  0x24   :  { %s1144_s10 = sld [smem:[#allocation2 + $0x9]]  ;;  %s1146_s11 = sld [smem:[#allocation2 + $0x24]] }
  0x25   :  { %s1148_s12 = sld [smem:[#allocation2 + $0x3f]]  ;;  %s1150_s13 = sld [smem:[#allocation2 + $0x12]] }
  0x26   :  { %335 = vrot.lane.b32.xlu1 %v1116_v1, %s1074_s26  ;;  %333 = vrot.lane.b32.xlu0 %v1109_v0, %s1074_s26  ;;  %s1152_s14 = sld [smem:[#allocation2 + $0x2d]]  ;;  %s1154_s15 = sld [smem:[#allocation2 + $0x48]] }
  0x27   :  { %s1156_s16 = sld [smem:[#allocation2 + $0x1]]  ;;  %s1158_s17 = sld [smem:[#allocation2 + $0x1c]]  ;;  %v42_v2 = vstv %s1132_s4  ;;  %v50_v4 = vstv %s1136_s6 }
  0x28   :  { %s1160_s18 = sld [smem:[#allocation2 + $0x37]]  ;;  %s1162_s19 = sld [smem:[#allocation2 + $0xa]]  ;;  %v44_v6 = vmul.f32 %v42_v2, %v1116_v1  ;;  %v46_v7 = vstv %s1134_s5  ;;  %v52_v9 = vmul.f32 %v50_v4, %v1116_v1  ;;  %v54_v13 = vstv %s1138_s7 }
  0x29   :  { %s1164_s20 = sld [smem:[#allocation2 + $0x25]]  ;;  %s1166_s1 = sld [smem:[#allocation2 + $0x40]]  ;;  %v58_v10 = vstv %s1140_s8  ;;  %v62_v16 = vstv %s1142_s9  ;;  %v43_v17 = vmul.f32 %v42_v2, %v1109_v0  ;;  %v51_v27 = vmul.f32 %v50_v4, %v1109_v0 }
  0x2a   :  { %432 = vrot.lane.b32.xlu1 %v1116_v1, %s1075_s27  ;;  %430 = vrot.lane.b32.xlu0 %v1109_v0, %s1075_s27  ;;  %s1168_s2 = sld [smem:[#allocation2 + $0x13]]  ;;  %s1170_s21 = sld [smem:[#allocation2 + $0x2e]]  ;;  %v66_v3 = vstv %s1144_s10  ;;  %v78_v5 = vstv %s1146_s11  ;;  %v48_v18 = vadd.f32 %v46_v7, %v44_v6  ;;  %v60_v19 = vmul.f32 %v58_v10, %v1116_v1 }
  0x2b   :  { %s1172_s22 = sld [smem:[#allocation2 + $0x49]]  ;;  %s1174_s23 = sld [smem:[#allocation2 + $0x2]]  ;;  %v68_v8 = vmul.f32 %v66_v3, %v1116_v1  ;;  %v80_v11 = vmul.f32 %v78_v5, %v1116_v1  ;;  %v90_v12 = vstv %s1148_s12  ;;  %v102_v14 = vstv %s1150_s13 }
  0x2c   :  { %s1176_s24 = sld [smem:[#allocation2 + $0x1d]]  ;;  %s1178_s25 = sld [smem:[#allocation2 + $0x38]]  ;;  %v114_v15 = vstv %s1152_s14  ;;  %v92_v21 = vmul.f32 %v90_v12, %v1116_v1  ;;  %v56_v22 = vadd.f32 %v54_v13, %v52_v9  ;;  %v104_v24 = vmul.f32 %v102_v14, %v1116_v1 }
  0x2d   :  { %1857 = sst [smem:[#allocation8_spill]] %s1156_s16  ;;  %s1182_s26 = sld [smem:[#allocation2 + $0xb]]  ;;  %v72_v20 = vrot.slane %v68_v8, 1  ;;  %v84_v23 = vrot.slane %v80_v11, 1  ;;  %v116_v25 = vmul.f32 %v114_v15, %v1116_v1  ;;  %v126_v26 = vstv %s1154_s15 }
  0x2e   :  { %529 = vrot.lane.b32.xlu1 %v1116_v1, %s1076_s28  ;;  %527 = vrot.lane.b32.xlu0 %v1109_v0, %s1076_s28  ;;  %1858 = sst [smem:[#allocation9_spill]] %s1158_s17  ;;  %s1184_s27 = sld [smem:[#allocation2 + $0x26]]  ;;  %v59_v28 = vmul.f32 %v58_v10, %v1109_v0  ;;  %v67_v29 = vmul.f32 %v66_v3, %v1109_v0  ;;  %v79_v31 = vmul.f32 %v78_v5, %v1109_v0  ;;  %v96_v35 = vrot.slane %v92_v21, 1 }
  0x2f   :  { %1859 = sst [smem:[#allocation10_spill]] %s1160_s18  ;;  %s1188_s28 = sld [smem:[#allocation2 + $0x41]]  ;;  %v91_v32 = vmul.f32 %v90_v12, %v1109_v0  ;;  %v64_v33 = vadd.f32 %v62_v16, %v60_v19  ;;  %v76_v34 = vadd.f32 %v72_v20, %v48_v18  ;;  %v47_v36 = vadd.f32 %v46_v7, %v43_v17 }
  0x30   :  { %1860 = sst [smem:[#allocation11_spill]] %s1162_s19  ;;  %s1201_s6 = sld [smem:[#allocation2 + $0x1e]]  ;;  %v88_v37 = vadd.f32 %v84_v23, %v56_v22  ;;  %v108_v38 = vrot.slane %v104_v24, 2  ;;  %v120_v39 = vrot.slane %v116_v25, 2  ;;  %v128_v40 = vmul.f32 %v126_v26, %v1116_v1 }
  0x31   :  { %1861 = sst [smem:[#allocation12_spill]] %s1164_s20  ;;  %s1199_s4 = sld [smem:[#allocation2 + $0x3]]  ;;  %v55_v41 = vadd.f32 %v54_v13, %v51_v27  ;;  %v63_v42 = vadd.f32 %v62_v16, %v59_v28  ;;  %v71_v43 = vrot.slane %v67_v29, 1  ;;  %v103_v44 = vmul.f32 %v102_v14, %v1109_v0 }
  0x32   :  { %626 = vrot.lane.b32.xlu1 %v1116_v1, %s1077_s0  ;;  %624 = vrot.lane.b32.xlu0 %v1109_v0, %s1077_s0  ;;  %1862 = sst [smem:[#allocation13_spill]] %s1166_s1  ;;  %s1190_s0 = sld [smem:[#allocation2 + $0x14]]  ;;  %v83_v45 = vrot.slane %v79_v31, 1  ;;  %v95_v46 = vrot.slane %v91_v32, 1  ;;  %v115_v47 = vmul.f32 %v114_v15, %v1109_v0  ;;  %v127_v48 = vmul.f32 %v126_v26, %v1109_v0 }
  0x33   :  { %1863 = sst [smem:[#allocation14_spill]] %s1168_s2  ;;  %s1207_s10 = sld [smem:[#allocation2 + $0x39]]  ;;  %v100_v49 = vadd.f32 %v96_v35, %v64_v33  ;;  %v147_v51 = vstv %s1156_s16  ;;  %v1277_v52 = vadd.f32 %v108_v38, %v76_v34  ;;  %v132_v53 = vrot.slane %v128_v40, 2 }
  0x34   :  { %1864 = sst [smem:[#allocation15_spill]] %s1170_s21  ;;  %s1209_s11 = sld [smem:[#allocation2 + $0xc]]  ;;  %v153_v54 = vstv %s1158_s17  ;;  %v159_v55 = vstv %s1160_s18  ;;  %v1285_v56 = vadd.f32 %v120_v39, %v88_v37  ;;  %v165_v57 = vstv %s1162_s19 }
  0x35   :  { %1865 = sst [smem:[#allocation16_spill]] %s1172_s22  ;;  %s1214_s5 = sld [smem:[#allocation2 + $0x27]]  ;;  %v75_v58 = vadd.f32 %v71_v43, %v47_v36  ;;  %v107_v59 = vrot.slane %v103_v44, 2  ;;  %v87_v60 = vadd.f32 %v83_v45, %v55_v41  ;;  %v99_v61 = vadd.f32 %v95_v46, %v63_v42 }
  0x36   :  { %723 = vrot.lane.b32.xlu1 %v1116_v1, %s1078_s29  ;;  %721 = vrot.lane.b32.xlu0 %v1109_v0, %s1078_s29  ;;  %1866 = sst [smem:[#allocation17_spill]] %s1174_s23  ;;  %s1192_s29 = sld [smem:[#allocation2 + $0x2f]]  ;;  %v119_v62 = vrot.slane %v115_v47, 2  ;;  %v131_v63 = vrot.slane %v127_v48, 2  ;;  %v201_v2 = vstv %s1168_s2  ;;  %v213_v3 = vstv %s1170_s21 }
  0x37   :  { %1867 = sst [smem:[#allocation18_spill]] %s1176_s24  ;;  %s1222_s8 = sld [smem:[#allocation2 + $0x30]]  ;;  %v1304_v4 = vadd.f32 %v132_v53, %v100_v49  ;;  %v225_v5 = vstv %s1172_s22  ;;  %v244_v6 = vstv %s1174_s23  ;;  %v250_v7 = vstv %s1176_s24 }
  0x38   :  { %1868 = sst [smem:[#allocation19_spill]] %s1178_s25  ;;  %s1216_s3 = sld [smem:[#allocation2 + $0x42]]  ;;  %v1313_v8 = vadd.f32 %v107_v59, %v75_v58  ;;  %v256_v9 = vstv %s1178_s25  ;;  %v262_v10 = vstv %s1182_s26  ;;  %v274_v11 = vstv %s1184_s27 }
  0x39   :  { %1869 = sst [smem:[#allocation20_spill]] %s1182_s26  ;;  %s1226_s7 = sld [smem:[#allocation2 + $0x4b]]  ;;  %v1322_v12 = vadd.f32 %v119_v62, %v87_v60  ;;  %v1324_v13 = vadd.f32 %v131_v63, %v99_v61  ;;  %v286_v14 = vstv %s1188_s28  ;;  %v298_v15 = vstv %s1190_s0 }
  0x3a   :  { %820 = vrot.lane.b32.xlu1 %v1116_v1, %s1079_s30  ;;  %818 = vrot.lane.b32.xlu0 %v1109_v0, %s1079_s30  ;;  %1870 = sst [smem:[#allocation21_spill]] %s1184_s27  ;;  %s1194_s30 = sld [smem:[#allocation2 + $0x4a]]  ;;  %v177_v0 = vstv %s1164_s20  ;;  %v189_v1 = vstv %s1166_s1 }
  0x3b   :  { %1871 = sst [smem:[#allocation22_spill]] %s1188_s28  ;;  %s1228_s12 = sld [smem:[#allocation2 + $0x4]]  ;;  %v341_v18 = vstv %s1199_s4  ;;  %v353_v20 = vstv %s1207_s10  ;;  %v359_v21 = vstv %s1209_s11  ;;  %v371_v22 = vstv %s1214_s5 }
  0x3c   :  { %1872 = sst [smem:[#allocation23_spill]] %s1190_s0  ;;  %s1234_s13 = sld [smem:[#allocation2 + $0x3a]]  ;;  %v310_v16 = vstv %s1192_s29 }
  0x3d   :  { %1873 = sst [smem:[#allocation24_spill]] %s1192_s29  ;;  %s1232_s9 = sld [smem:[#allocation2 + $0x1f]]  ;;  %v407_v25 = vstv %s1222_s8 }
  0x3e   :  { %1875 = sst [smem:[#allocation26_spill]] %s1199_s4  ;;  %s1240_s14 = sld [smem:[#allocation2 + $0xd]]  ;;  %v383_v23 = vstv %s1216_s3 }
  0x3f   :  { %1876 = sst [smem:[#allocation27_spill]] %s1201_s6  ;;  %s1220_s6 = sld [smem:[#allocation2 + $0x15]] }
  0x40   :  { %1874 = sst [smem:[#allocation25_spill]] %s1194_s30  ;;  %s1292_s18 = sld [smem:[#allocation2 + $0xf]]  ;;  %v322_v17 = vstv %s1194_s30 }
  0x41   :  { %1877 = sst [smem:[#allocation28_spill]] %s1207_s10  ;;  %s1250_s15 = sld [smem:[#allocation2 + $0x31]] }
  0x42   :  { %1878 = sst [smem:[#allocation29_spill]] %s1209_s11  ;;  %s1288_s16 = sld [smem:[#allocation2 + $0x21]] }
  0x43   :  { %1879 = sst [smem:[#allocation30_spill]] %s1214_s5  ;;  %s1294_s17 = sld [smem:[#allocation2 + $0x2a]] }
  0x44   :  { %1880 = sst [smem:[#allocation31_spill]] %s1216_s3  ;;  %s1300_s19 = sld [smem:[#allocation2 + $0x45]] }
  0x45   :  { %1881 = sst [smem:[#allocation32_spill]] %s1220_s6  ;;  %s1311_s20 = sld [smem:[#allocation2 + $0x4e]]  ;;  %v395_v24 = vstv %s1220_s6 }
  0x46   :  { %1882 = sst [smem:[#allocation33_spill]] %s1222_s8  ;;  %s1904_s2 = sld [smem:[#allocation27_spill]] }
  0x47   :  { %1883 = sst [smem:[#allocation34_spill]] %s1226_s7  ;;  %s1246_s7 = sld [smem:[#allocation2 + $0x43]] }
  0x48   :  { %1884 = sst [smem:[#allocation35_spill]] %s1228_s12  ;;  %s1242_s12 = sld [smem:[#allocation2 + $0x28]] }
  0x49   :  { %1885 = sst [smem:[#allocation36_spill]] %s1232_s9  ;;  %s1248_s9 = sld [smem:[#allocation2 + $0x16]] }
  0x4a   :  { %1886 = sst [smem:[#allocation37_spill]] %s1234_s13  ;;  %s1252_s13 = sld [smem:[#allocation2 + $0x4c]] }
  0x4b   :  { %1887 = sst [smem:[#allocation38_spill]] %s1240_s14  ;;  %s1257_s14 = sld [smem:[#allocation2 + $0x20]] }
  0x4c   :  { %1891 = sst [smem:[#allocation42_spill]] %s1250_s15  ;;  %s1273_s15 = sld [smem:[#allocation2 + $0x17]]  ;;  %v347_v19 = vstv %s1904_s2 }
  0x4d   :  { %1889 = sst [smem:[#allocation40_spill]] %s1246_s7  ;;  %s1318_s21 = sld [smem:[#allocation2 + $0x7]]  ;;  %v480_v32 = vstv %s1246_s7 }
  0x4e   :  { %1888 = sst [smem:[#allocation39_spill]] %s1242_s12  ;;  %s1255_s12 = sld [smem:[#allocation2 + $0x5]] }
  0x4f   :  { %1890 = sst [smem:[#allocation41_spill]] %s1248_s9  ;;  %s1260_s9 = sld [smem:[#allocation2 + $0x3b]] }
  0x50   :  { %1892 = sst [smem:[#allocation43_spill]] %s1252_s13  ;;  %s1262_s13 = sld [smem:[#allocation2 + $0xe]] }
  0x51   :  { %1894 = sst [smem:[#allocation45_spill]] %s1257_s14  ;;  %s1268_s14 = sld [smem:[#allocation2 + $0x44]] }
  0x52   :  { %1899 = sst [smem:[#allocation50_spill]] %s1288_s16  ;;  %s1328_s24 = sld [smem:[#allocation2 + $0x3d]] }
  0x53   :  { %1901 = sst [smem:[#allocation52_spill]] %s1292_s18  ;;  %s1309_s18 = sld [smem:[#allocation2 + $0x33]] }
  0x54   :  { %1893 = sst [smem:[#allocation44_spill]] %s1255_s12  ;;  %s1266_s12 = sld [smem:[#allocation2 + $0x29]] }
  0x55   :  { %1895 = sst [smem:[#allocation46_spill]] %s1260_s9  ;;  %s1275_s9 = sld [smem:[#allocation2 + $0x32]] }
  0x56   :  { %1896 = sst [smem:[#allocation47_spill]] %s1262_s13  ;;  %s1281_s13 = sld [smem:[#allocation2 + $0x4d]] }
  0x57   :  { %1902 = sst [smem:[#allocation53_spill]] %s1300_s19  ;;  %s1320_s23 = sld [smem:[#allocation2 + $0x22]] }
  0x58   :  { %1905 = sst [smem:[#allocation55_spill]] %s1318_s21  ;;  %s1330_s25 = sld [smem:[#allocation2 + $0x10]] }
  0x59   :  { %1903 = sst [smem:[#allocation54_spill]] %s1309_s18  ;;  %s1908_s27 = sld [smem:[#allocation34_spill]] }
  0x5a   :  { %1897 = sst [smem:[#allocation48_spill]] %s1266_s12  ;;  %s1283_s12 = sld [smem:[#allocation2 + $0x6]] }
  0x5b   :  { %1898 = sst [smem:[#allocation49_spill]] %s1275_s9  ;;  %s1290_s9 = sld [smem:[#allocation2 + $0x3c]] }
  0x5c   :  { %s1909_s26 = sld [smem:[#allocation35_spill]]  ;;  %s1911_s1 = sld [smem:[#allocation36_spill]] }
  0x5d   :  { %1906 = sst [smem:[#allocation56_spill]] %s1320_s23  ;;  %s1336_s22 = sld [smem:[#allocation2 + $0x2b]] }
  0x5e   :  { %1907 = sst [smem:[#allocation57_spill]] %s1330_s25  ;;  %s1338_s23 = sld [smem:[#allocation2 + $0x46]] }
  0x5f   :  { %s1913_s21 = sld [smem:[#allocation37_spill]]  ;;  %s1914_s0 = sld [smem:[#allocation38_spill]]  ;;  %v419_v26 = vstv %s1908_s27 }
  0x60   :  { %s1915_s28 = sld [smem:[#allocation39_spill]]  ;;  %s1344_s25 = sld [smem:[#allocation2 + $0x19]] }
  0x61   :  { %1900 = sst [smem:[#allocation51_spill]] %s1290_s9  ;;  %s1302_s9 = sld [smem:[#allocation2 + $0x18]] }
  0x62   :  { %s1346_s29 = sld [smem:[#allocation2 + $0x34]]  ;;  %s1918_s4 = sld [smem:[#allocation41_spill]]  ;;  %v438_v27 = vstv %s1909_s26  ;;  %v444_v28 = vstv %s1911_s1 }
  0x63   :  { %1910 = sst [smem:[#allocation58_spill]] %s1336_s22  ;;  %s1920_s30 = sld [smem:[#allocation43_spill]] }
  0x64   :  { %1912 = sst [smem:[#allocation59_spill]] %s1338_s23  ;;  %s1919_s2 = sld [smem:[#allocation42_spill]] }
  0x65   :  { %s1921_s10 = sld [smem:[#allocation44_spill]]  ;;  %s1922_s11 = sld [smem:[#allocation45_spill]]  ;;  %v450_v29 = vstv %s1913_s21  ;;  %v456_v30 = vstv %s1914_s0 }
  0x66   :  { %1916 = sst [smem:[#allocation38_spill]] %s1344_s25  ;;  %s1354_s5 = sld [smem:[#allocation2 + $0x4f]]  ;;  %v468_v31 = vstv %s1915_s28 }
  0x67   :  { %s1923_s3 = sld [smem:[#allocation46_spill]]  ;;  %s1356_s25 = sld [smem:[#allocation2 + $0x8]] }
  0x68   :  { %1917 = sst [smem:[#allocation60_spill]] %s1346_s29  ;;  %s1924_s23 = sld [smem:[#allocation47_spill]]  ;;  %v492_v33 = vstv %s1918_s4 }
  0x69   :  { %s1925_s29 = sld [smem:[#allocation48_spill]]  ;;  %s1926_s22 = sld [smem:[#allocation49_spill]]  ;;  %v516_v35 = vstv %s1920_s30 }
  0x6a   :  { %s1362_s6 = sld [smem:[#allocation2 + $0x23]]  ;;  %s1364_s27 = sld [smem:[#allocation2 + $0x3e]]  ;;  %v504_v34 = vstv %s1919_s2 }
  0x6b   :  { %s1370_s1 = sld [smem:[#allocation2 + $0x11]]  ;;  %s1930_s21 = sld [smem:[#allocation52_spill]]  ;;  %v535_v36 = vstv %s1921_s10  ;;  %v541_v37 = vstv %s1922_s11 }
  0x6c   :  { %s1372_s8 = sld [smem:[#allocation2 + $0x2c]]  ;;  %s1932_s7 = sld [smem:[#allocation55_spill]] }
  0x6d   :  { %v547_v38 = vstv %s1923_s3  ;;  %s1933_s4 = sld [smem:[#allocation56_spill]]  ;;  %s1934_s30 = sld [smem:[#allocation57_spill]] }
  0x6e   :  { %s1935_s2 = sld [smem:[#allocation58_spill]]  ;;  %s1936_s28 = sld [smem:[#allocation59_spill]] }
  0x6f   :  { %s1937_s10 = sld [smem:[#allocation38_spill]]  ;;  %s1938_s11 = sld [smem:[#allocation60_spill]] }
  0x70   :  { %1927 = sst [smem:[#allocation46_spill]] %s1364_s27  ;;  %s1984_s3 = sld [smem:[#allocation50_spill]] }
  0x71   :  { %1929 = sst [smem:[#allocation47_spill]] %s1370_s1 }
  0x72   :  { %1931 = sst [smem:[#allocation48_spill]] %s1372_s8 }
  0x90   :  { %v138_v48 = vpop.permute.xlu0 %137  ;;  %v237_v49 = vpop.permute.xlu1 %236 }
  0x94   :  { %v140_v61 = vpop.permute.xlu0 %139  ;;  %v239_v62 = vpop.permute.xlu1 %238 }
  0x95   :  { %v144_v43 = vsel %vm143_vm0, %v138_v48, %v140_v61  ;;  %v145_v42 = vsel %vm143_vm0, %v140_v61, %v138_v48  ;;  %v1412_v59 = vsel %vm240_vm1, %v237_v49, %v239_v62  ;;  %v1416_v60 = vsel %vm240_vm1, %v239_v62, %v237_v49 }
  0x96   :  { %v148_v53 = vmul.f32 %v147_v51, %v144_v43  ;;  %v149_v46 = vmul.f32 %v147_v51, %v145_v42  ;;  %v154_v44 = vmul.f32 %v153_v54, %v144_v43  ;;  %v155_v45 = vmul.f32 %v153_v54, %v145_v42 }
  0x97   :  { %v160_v48 = vmul.f32 %v159_v55, %v144_v43  ;;  %v161_v61 = vmul.f32 %v159_v55, %v145_v42  ;;  %v166_v63 = vmul.f32 %v165_v57, %v144_v43  ;;  %v167_v49 = vmul.f32 %v165_v57, %v145_v42 }
  0x98   :  { %v150_v62 = vadd.f32 %v148_v53, %v1313_v8  ;;  %v151_v51 = vadd.f32 %v149_v46, %v1277_v52  ;;  %v156_v47 = vadd.f32 %v154_v44, %v1322_v12  ;;  %v157_v58 = vadd.f32 %v155_v45, %v1285_v56 }
  0x99   :  { %v162_v54 = vadd.f32 %v160_v48, %v1324_v13  ;;  %v163_v41 = vadd.f32 %v161_v61, %v1304_v4  ;;  %v170_v40 = vrot.slane %v166_v63, 1  ;;  %v171_v55 = vrot.slane %v167_v49, 1 }
  0x9a   :  { %v178_v39 = vmul.f32 %v177_v0, %v144_v43  ;;  %v179_v57 = vmul.f32 %v177_v0, %v145_v42  ;;  %v190_v8 = vmul.f32 %v189_v1, %v144_v43  ;;  %v191_v52 = vmul.f32 %v189_v1, %v145_v42 }
  0x9b   :  { %v174_v46 = vadd.f32 %v170_v40, %v150_v62  ;;  %v175_v12 = vadd.f32 %v171_v55, %v151_v51  ;;  %v202_v56 = vmul.f32 %v201_v2, %v144_v43  ;;  %v203_v13 = vmul.f32 %v201_v2, %v145_v42 }
  0x9c   :  { %v182_v44 = vrot.slane %v178_v39, 1  ;;  %v183_v4 = vrot.slane %v179_v57, 1  ;;  %v194_v45 = vrot.slane %v190_v8, 1  ;;  %v195_v53 = vrot.slane %v191_v52, 1 }
  0x9d   :  { %v206_v63 = vrot.slane %v202_v56, 2  ;;  %v207_v0 = vrot.slane %v203_v13, 2  ;;  %v214_v48 = vmul.f32 %v213_v3, %v144_v43  ;;  %v215_v1 = vmul.f32 %v213_v3, %v145_v42 }
  0x9e   :  { %v186_v40 = vadd.f32 %v182_v44, %v156_v47  ;;  %v187_v61 = vadd.f32 %v183_v4, %v157_v58  ;;  %v198_v49 = vadd.f32 %v194_v45, %v162_v54  ;;  %v199_v2 = vadd.f32 %v195_v53, %v163_v41 }
  0x9f   :  { %v210_v39 = vadd.f32 %v206_v63, %v174_v46  ;;  %v211_v62 = vadd.f32 %v207_v0, %v175_v12  ;;  %v218_v51 = vrot.slane %v214_v48, 2  ;;  %v219_v55 = vrot.slane %v215_v1, 2 }
  0xa0   :  { %v226_v57 = vmul.f32 %v225_v5, %v144_v43  ;;  %v227_v8 = vmul.f32 %v225_v5, %v145_v42  ;;  %v245_v52 = vmul.f32 %v244_v6, %v1412_v59  ;;  %v246_v3 = vmul.f32 %v244_v6, %v1416_v60 }
  0xa1   :  { %v222_v41 = vadd.f32 %v218_v51, %v186_v40  ;;  %v223_v47 = vadd.f32 %v219_v55, %v187_v61  ;;  %v251_v43 = vmul.f32 %v250_v7, %v1412_v59  ;;  %v252_v5 = vmul.f32 %v250_v7, %v1416_v60  ;;  %v336_v55 = vpop.permute.xlu1 %335 }
  0xa2   :  { %v230_v42 = vrot.slane %v226_v57, 2  ;;  %v231_v58 = vrot.slane %v227_v8, 2  ;;  %v247_v54 = vadd.f32 %v245_v52, %v210_v39  ;;  %v248_v6 = vadd.f32 %v246_v3, %v211_v62  ;;  %v334_v57 = vpop.permute.xlu0 %333 }
  0xa3   :  { %v253_v46 = vadd.f32 %v251_v43, %v222_v41  ;;  %v254_v12 = vadd.f32 %v252_v5, %v223_v47  ;;  %v257_v56 = vmul.f32 %v256_v9, %v1412_v59  ;;  %v258_v13 = vmul.f32 %v256_v9, %v1416_v60 }
  0xa4   :  { %v234_v44 = vadd.f32 %v230_v42, %v198_v49  ;;  %v235_v4 = vadd.f32 %v231_v58, %v199_v2  ;;  %v263_v45 = vmul.f32 %v262_v10, %v1412_v59  ;;  %v264_v7 = vmul.f32 %v262_v10, %v1416_v60 }
  0xa5   :  { %v275_v53 = vmul.f32 %v274_v11, %v1412_v59  ;;  %v276_v63 = vmul.f32 %v274_v11, %v1416_v60  ;;  %v287_v0 = vmul.f32 %v286_v14, %v1412_v59  ;;  %v288_v9 = vmul.f32 %v286_v14, %v1416_v60 }
  0xa6   :  { %v259_v48 = vadd.f32 %v257_v56, %v234_v44  ;;  %v260_v1 = vadd.f32 %v258_v13, %v235_v4  ;;  %v267_v40 = vrot.slane %v263_v45, 1  ;;  %v268_v61 = vrot.slane %v264_v7, 1 }
  0xa7   :  { %v279_v49 = vrot.slane %v275_v53, 1  ;;  %v280_v10 = vrot.slane %v276_v63, 1  ;;  %v291_v2 = vrot.slane %v287_v0, 1  ;;  %v292_v39 = vrot.slane %v288_v9, 1 }
  0xa8   :  { %v271_v62 = vadd.f32 %v267_v40, %v247_v54  ;;  %v272_v11 = vadd.f32 %v268_v61, %v248_v6  ;;  %v299_v51 = vmul.f32 %v298_v15, %v1412_v59  ;;  %v300_v14 = vmul.f32 %v298_v15, %v1416_v60 }
  0xa9   :  { %v283_v8 = vadd.f32 %v279_v49, %v253_v46  ;;  %v284_v52 = vadd.f32 %v280_v10, %v254_v12  ;;  %v295_v3 = vadd.f32 %v291_v2, %v259_v48  ;;  %v296_v41 = vadd.f32 %v292_v39, %v260_v1 }
  0xaa   :  { %v303_v47 = vrot.slane %v299_v51, 2  ;;  %v304_v43 = vrot.slane %v300_v14, 2  ;;  %v311_v5 = vmul.f32 %v310_v16, %v1412_v59  ;;  %v312_v42 = vmul.f32 %v310_v16, %v1416_v60 }
  0xab   :  { %v323_v15 = vmul.f32 %v322_v17, %v1412_v59  ;;  %v324_v58 = vmul.f32 %v322_v17, %v1416_v60  ;;  %v338_v54 = vsel %vm337_vm2, %v334_v57, %v336_v55  ;;  %v339_v6 = vsel %vm337_vm2, %v336_v55, %v334_v57 }
  0xac   :  { %v307_v46 = vadd.f32 %v303_v47, %v271_v62  ;;  %v308_v12 = vadd.f32 %v304_v43, %v272_v11  ;;  %v315_v56 = vrot.slane %v311_v5, 2  ;;  %v316_v13 = vrot.slane %v312_v42, 2  ;;  %v433_v43 = vpop.permute.xlu1 %432 }
  0xad   :  { %v327_v16 = vrot.slane %v323_v15, 2  ;;  %v328_v44 = vrot.slane %v324_v58, 2  ;;  %v342_v59 = vmul.f32 %v341_v18, %v338_v54  ;;  %v343_v17 = vmul.f32 %v341_v18, %v339_v6 }
  0xae   :  { %v319_v60 = vadd.f32 %v315_v56, %v283_v8  ;;  %v320_v4 = vadd.f32 %v316_v13, %v284_v52  ;;  %v348_v45 = vmul.f32 %v347_v19, %v338_v54  ;;  %v349_v7 = vmul.f32 %v347_v19, %v339_v6 }
  0xaf   :  { %v331_v53 = vadd.f32 %v327_v16, %v295_v3  ;;  %v332_v63 = vadd.f32 %v328_v44, %v296_v41  ;;  %v344_v0 = vadd.f32 %v342_v59, %v307_v46  ;;  %v345_v9 = vadd.f32 %v343_v17, %v308_v12 }
  0xb0   :  { %v350_v48 = vadd.f32 %v348_v45, %v319_v60  ;;  %v351_v1 = vadd.f32 %v349_v7, %v320_v4  ;;  %v354_v18 = vmul.f32 %v353_v20, %v338_v54  ;;  %v355_v40 = vmul.f32 %v353_v20, %v339_v6 }
  0xb1   :  { %v360_v61 = vmul.f32 %v359_v21, %v338_v54  ;;  %v361_v49 = vmul.f32 %v359_v21, %v339_v6  ;;  %v372_v10 = vmul.f32 %v371_v22, %v338_v54  ;;  %v373_v19 = vmul.f32 %v371_v22, %v339_v6 }
  0xb2   :  { %v356_v2 = vadd.f32 %v354_v18, %v331_v53  ;;  %v357_v39 = vadd.f32 %v355_v40, %v332_v63  ;;  %v384_v62 = vmul.f32 %v383_v23, %v338_v54  ;;  %v385_v11 = vmul.f32 %v383_v23, %v339_v6  ;;  %v431_v23 = vpop.permute.xlu0 %430 }
  0xb3   :  { %v364_v51 = vrot.slane %v360_v61, 1  ;;  %v365_v14 = vrot.slane %v361_v49, 1  ;;  %v376_v55 = vrot.slane %v372_v10, 1  ;;  %v377_v20 = vrot.slane %v373_v19, 1 }
  0xb4   :  { %v388_v57 = vrot.slane %v384_v62, 1  ;;  %v389_v8 = vrot.slane %v385_v11, 1  ;;  %v396_v21 = vmul.f32 %v395_v24, %v338_v54  ;;  %v397_v22 = vmul.f32 %v395_v24, %v339_v6 }
  0xb5   :  { %v368_v52 = vadd.f32 %v364_v51, %v344_v0  ;;  %v369_v3 = vadd.f32 %v365_v14, %v345_v9  ;;  %v380_v41 = vadd.f32 %v376_v55, %v350_v48  ;;  %v381_v47 = vadd.f32 %v377_v20, %v351_v1 }
  0xb6   :  { %v392_v5 = vadd.f32 %v388_v57, %v356_v2  ;;  %v393_v42 = vadd.f32 %v389_v8, %v357_v39  ;;  %v400_v15 = vrot.slane %v396_v21, 2  ;;  %v401_v58 = vrot.slane %v397_v22, 2 }
  0xb7   :  { %v408_v46 = vmul.f32 %v407_v25, %v338_v54  ;;  %v409_v12 = vmul.f32 %v407_v25, %v339_v6  ;;  %v420_v24 = vmul.f32 %v419_v26, %v338_v54  ;;  %v421_v56 = vmul.f32 %v419_v26, %v339_v6 }
  0xb8   :  { %v404_v13 = vadd.f32 %v400_v15, %v368_v52  ;;  %v405_v16 = vadd.f32 %v401_v58, %v369_v3  ;;  %v435_v44 = vsel %vm434_vm3, %v431_v23, %v433_v43  ;;  %v436_v59 = vsel %vm434_vm3, %v433_v43, %v431_v23 }
  0xb9   :  { %v412_v17 = vrot.slane %v408_v46, 2  ;;  %v413_v60 = vrot.slane %v409_v12, 2  ;;  %v424_v4 = vrot.slane %v420_v24, 2  ;;  %v425_v45 = vrot.slane %v421_v56, 2 }
  0xba   :  { %v439_v25 = vmul.f32 %v438_v27, %v435_v44  ;;  %v440_v26 = vmul.f32 %v438_v27, %v436_v59  ;;  %v445_v54 = vmul.f32 %v444_v28, %v435_v44  ;;  %v446_v6 = vmul.f32 %v444_v28, %v436_v59 }
  0xbb   :  { %v416_v7 = vadd.f32 %v412_v17, %v380_v41  ;;  %v417_v53 = vadd.f32 %v413_v60, %v381_v47  ;;  %v428_v63 = vadd.f32 %v424_v4, %v392_v5  ;;  %v429_v0 = vadd.f32 %v425_v45, %v393_v42  ;;  %v530_v41 = vpop.permute.xlu1 %529 }
  0xbc   :  { %v441_v9 = vadd.f32 %v439_v25, %v404_v13  ;;  %v442_v48 = vadd.f32 %v440_v26, %v405_v16  ;;  %v451_v1 = vmul.f32 %v450_v29, %v435_v44  ;;  %v452_v27 = vmul.f32 %v450_v29, %v436_v59 }
  0xbd   :  { %v447_v18 = vadd.f32 %v445_v54, %v416_v7  ;;  %v448_v28 = vadd.f32 %v446_v6, %v417_v53  ;;  %v457_v40 = vmul.f32 %v456_v30, %v435_v44  ;;  %v458_v61 = vmul.f32 %v456_v30, %v436_v59 }
  0xbe   :  { %v453_v49 = vadd.f32 %v451_v1, %v428_v63  ;;  %v454_v10 = vadd.f32 %v452_v27, %v429_v0  ;;  %v469_v19 = vmul.f32 %v468_v31, %v435_v44  ;;  %v470_v2 = vmul.f32 %v468_v31, %v436_v59 }
  0xbf   :  { %v461_v39 = vrot.slane %v457_v40, 1  ;;  %v462_v62 = vrot.slane %v458_v61, 1  ;;  %v481_v11 = vmul.f32 %v480_v32, %v435_v44  ;;  %v482_v51 = vmul.f32 %v480_v32, %v436_v59  ;;  %v528_v32 = vpop.permute.xlu0 %527 }
  0xc0   :  { %v473_v29 = vrot.slane %v469_v19, 1  ;;  %v474_v14 = vrot.slane %v470_v2, 1  ;;  %v493_v55 = vmul.f32 %v492_v33, %v435_v44  ;;  %v494_v30 = vmul.f32 %v492_v33, %v436_v59 }
  0xc1   :  { %v465_v20 = vadd.f32 %v461_v39, %v441_v9  ;;  %v466_v57 = vadd.f32 %v462_v62, %v442_v48  ;;  %v485_v8 = vrot.slane %v481_v11, 1  ;;  %v486_v31 = vrot.slane %v482_v51, 1 }
  0xc2   :  { %v477_v21 = vadd.f32 %v473_v29, %v447_v18  ;;  %v478_v22 = vadd.f32 %v474_v14, %v448_v28  ;;  %v497_v52 = vrot.slane %v493_v55, 2  ;;  %v498_v3 = vrot.slane %v494_v30, 2 }
  0xc3   :  { %v489_v47 = vadd.f32 %v485_v8, %v453_v49  ;;  %v490_v43 = vadd.f32 %v486_v31, %v454_v10  ;;  %v505_v23 = vmul.f32 %v504_v34, %v435_v44  ;;  %v506_v33 = vmul.f32 %v504_v34, %v436_v59  ;;  %v627_v31 = vpop.permute.xlu1 %626 }
  0xc4   :  { %v501_v5 = vadd.f32 %v497_v52, %v465_v20  ;;  %v502_v42 = vadd.f32 %v498_v3, %v466_v57  ;;  %v517_v15 = vmul.f32 %v516_v35, %v435_v44  ;;  %v518_v58 = vmul.f32 %v516_v35, %v436_v59 }
  0xc5   :  { %v509_v46 = vrot.slane %v505_v23, 2  ;;  %v510_v12 = vrot.slane %v506_v33, 2  ;;  %v532_v24 = vsel %vm531_vm4, %v528_v32, %v530_v41  ;;  %v533_v56 = vsel %vm531_vm4, %v530_v41, %v528_v32 }
  0xc6   :  { %v521_v13 = vrot.slane %v517_v15, 2  ;;  %v522_v34 = vrot.slane %v518_v58, 2  ;;  %v536_v16 = vmul.f32 %v535_v36, %v532_v24  ;;  %v537_v44 = vmul.f32 %v535_v36, %v533_v56 }
  0xc7   :  { %v513_v35 = vadd.f32 %v509_v46, %v477_v21  ;;  %v514_v59 = vadd.f32 %v510_v12, %v478_v22  ;;  %v542_v17 = vmul.f32 %v541_v37, %v532_v24  ;;  %v543_v60 = vmul.f32 %v541_v37, %v533_v56  ;;  %v625_v21 = vpop.permute.xlu0 %624 }
  0xc8   :  { %v525_v4 = vadd.f32 %v521_v13, %v489_v47  ;;  %v526_v45 = vadd.f32 %v522_v34, %v490_v43  ;;  %v538_v25 = vadd.f32 %v536_v16, %v501_v5  ;;  %v539_v26 = vadd.f32 %v537_v44, %v502_v42 }
  0xc9   :  { %v544_v54 = vadd.f32 %v542_v17, %v513_v35  ;;  %v545_v6 = vadd.f32 %v543_v60, %v514_v59  ;;  %v548_v36 = vmul.f32 %v547_v38, %v532_v24  ;;  %v549_v7 = vmul.f32 %v547_v38, %v533_v56 }
  0xca   :  { %v1976_v53 = vstv %s1924_s23  ;;  %v1978_v48 = vstv %s1925_s29  ;;  %v1980_v40 = vstv %s1268_s14  ;;  %v1982_v51 = vstv %s1273_s15  ;;  %s1989_s23 = sld [smem:[#allocation51_spill]]  ;;  %s2003_s29 = sld [smem:[#allocation54_spill]] }
  0xcb   :  { %v554_v63 = vmul.f32 %v1976_v53, %v532_v24  ;;  %v1977_v0 = vmov %v1976_v53  ;;  %v566_v1 = vmul.f32 %v1978_v48, %v532_v24  ;;  %v1979_v37 = vmov %v1978_v48 }
  0xcc   :  { %v555_v9 = vmul.f32 %v1977_v0, %v533_v56  ;;  %v567_v27 = vmul.f32 %v1979_v37, %v533_v56  ;;  %v550_v18 = vadd.f32 %v548_v36, %v525_v4  ;;  %v551_v28 = vadd.f32 %v549_v7, %v526_v45 }
  0xcd   :  { %v578_v61 = vmul.f32 %v1980_v40, %v532_v24  ;;  %v1981_v49 = vmov %v1980_v40  ;;  %v558_v19 = vrot.slane %v554_v63, 1  ;;  %v570_v39 = vrot.slane %v566_v1, 1 }
  0xce   :  { %v579_v10 = vmul.f32 %v1981_v49, %v533_v56  ;;  %v559_v2 = vrot.slane %v555_v9, 1  ;;  %v571_v38 = vrot.slane %v567_v27, 1  ;;  %v590_v29 = vmul.f32 %v1982_v51, %v532_v24 }
  0xcf   :  { %v582_v62 = vrot.slane %v578_v61, 1  ;;  %v1983_v14 = vmov %v1982_v51  ;;  %v562_v30 = vadd.f32 %v558_v19, %v538_v25  ;;  %v574_v57 = vadd.f32 %v570_v39, %v544_v54 }
  0xd0   :  { %v583_v11 = vrot.slane %v579_v10, 1  ;;  %v591_v55 = vmul.f32 %v1983_v14, %v533_v56  ;;  %v563_v20 = vadd.f32 %v559_v2, %v539_v26  ;;  %v575_v8 = vadd.f32 %v571_v38, %v545_v6 }
  0xd1   :  { %v586_v22 = vadd.f32 %v582_v62, %v550_v18  ;;  %v594_v3 = vrot.slane %v590_v29, 2  ;;  %v1985_v32 = vstv %s1926_s22  ;;  %v1987_v33 = vstv %s1281_s13  ;;  %s1994_s22 = sld [smem:[#allocation53_spill]] }
  0xd2   :  { %v587_v52 = vadd.f32 %v583_v11, %v551_v28  ;;  %v595_v41 = vrot.slane %v591_v55, 2  ;;  %v602_v47 = vmul.f32 %v1985_v32, %v532_v24  ;;  %v1986_v43 = vmov %v1985_v32 }
  0xd3   :  { %v603_v23 = vmul.f32 %v1986_v43, %v533_v56  ;;  %v614_v5 = vmul.f32 %v1987_v33, %v532_v24  ;;  %v1988_v42 = vmov %v1987_v33  ;;  %v598_v58 = vadd.f32 %v594_v3, %v562_v30  ;;  %v722_v33 = vpop.permute.xlu0 %721 }
  0xd4   :  { %v615_v15 = vmul.f32 %v1988_v42, %v533_v56  ;;  %v599_v46 = vadd.f32 %v595_v41, %v563_v20  ;;  %v629_v12 = vsel %vm628_vm5, %v625_v21, %v627_v31  ;;  %v630_v13 = vsel %vm628_vm5, %v627_v31, %v625_v21 }
  0xd5   :  { %v606_v34 = vrot.slane %v602_v47, 2  ;;  %v607_v16 = vrot.slane %v603_v23, 2  ;;  %v618_v44 = vrot.slane %v614_v5, 2  ;;  %v1990_v59 = vstv %s1283_s12  ;;  %v724_v23 = vpop.permute.xlu1 %723 }
  0xd6   :  { %v619_v35 = vrot.slane %v615_v15, 2  ;;  %v633_v17 = vmul.f32 %v1990_v59, %v629_v12  ;;  %v1991_v24 = vmov %v1990_v59  ;;  %v1992_v60 = vstv %s1984_s3 }
  0xd7   :  { %v634_v56 = vmul.f32 %v1991_v24, %v630_v13  ;;  %v639_v4 = vmul.f32 %v1992_v60, %v629_v12  ;;  %v1993_v45 = vmov %v1992_v60  ;;  %v610_v26 = vadd.f32 %v606_v34, %v574_v57 }
  0xd8   :  { %v640_v25 = vmul.f32 %v1993_v45, %v630_v13  ;;  %v611_v54 = vadd.f32 %v607_v16, %v575_v8  ;;  %v622_v6 = vadd.f32 %v618_v44, %v586_v22  ;;  %v623_v36 = vadd.f32 %v619_v35, %v587_v52 }
  0xd9   :  { %v635_v7 = vadd.f32 %v633_v17, %v598_v58  ;;  %v636_v53 = vadd.f32 %v634_v56, %v599_v46  ;;  %v1995_v63 = vstv %s1989_s23  ;;  %v641_v1 = vadd.f32 %v639_v4, %v610_v26 }
  0xda   :  { %v645_v0 = vmul.f32 %v1995_v63, %v629_v12  ;;  %v1996_v9 = vmov %v1995_v63  ;;  %v642_v37 = vadd.f32 %v640_v25, %v611_v54  ;;  %v1997_v27 = vstv %s1930_s21  ;;  %s1720_s21 = sld [smem:[#allocation2 + $0x50]] }
  0xdb   :  { %v646_v48 = vmul.f32 %v1996_v9, %v630_v13  ;;  %v651_v18 = vmul.f32 %v1997_v27, %v629_v12  ;;  %v1998_v28 = vmov %v1997_v27  ;;  %v1999_v10 = vstv %s1294_s17  ;;  %s1688_s17 = sld [smem:[#allocation2 + $0x47]] }
  0xdc   :  { %v652_v40 = vmul.f32 %v1998_v28, %v630_v13  ;;  %v647_v61 = vadd.f32 %v645_v0, %v622_v6  ;;  %v663_v19 = vmul.f32 %v1999_v10, %v629_v12  ;;  %v2000_v2 = vmov %v1999_v10 }
  0xdd   :  { %v648_v49 = vadd.f32 %v646_v48, %v623_v36  ;;  %v664_v39 = vmul.f32 %v2000_v2, %v630_v13  ;;  %v655_v38 = vrot.slane %v651_v18, 1  ;;  %v2001_v11 = vstv %s1994_s22 }
  0xde   :  { %v656_v62 = vrot.slane %v652_v40, 1  ;;  %v675_v51 = vmul.f32 %v2001_v11, %v629_v12  ;;  %v2002_v29 = vmov %v2001_v11  ;;  %v667_v55 = vrot.slane %v663_v19, 1 }
  0xdf   :  { %v676_v14 = vmul.f32 %v2002_v29, %v630_v13  ;;  %v668_v30 = vrot.slane %v664_v39, 1  ;;  %v2004_v20 = vstv %s1302_s9  ;;  %v659_v21 = vadd.f32 %v655_v38, %v635_v7 }
  0xe0   :  { %v687_v57 = vmul.f32 %v2004_v20, %v629_v12  ;;  %v2005_v8 = vmov %v2004_v20  ;;  %v660_v22 = vadd.f32 %v656_v62, %v636_v53  ;;  %v679_v52 = vrot.slane %v675_v51, 1 }
  0xe1   :  { %v688_v31 = vmul.f32 %v2005_v8, %v630_v13  ;;  %v680_v3 = vrot.slane %v676_v14, 1  ;;  %v671_v41 = vadd.f32 %v667_v55, %v641_v1  ;;  %v672_v32 = vadd.f32 %v668_v30, %v642_v37 }
  0xe2   :  { %v691_v47 = vrot.slane %v687_v57, 2  ;;  %v683_v5 = vadd.f32 %v679_v52, %v647_v61  ;;  %v2006_v15 = vstv %s2003_s29  ;;  %v2008_v35 = vstv %s1311_s20  ;;  %s1690_s20 = sld [smem:[#allocation2 + $0x1a]] }
  0xe3   :  { %v692_v43 = vrot.slane %v688_v31, 2  ;;  %v684_v42 = vadd.f32 %v680_v3, %v648_v49  ;;  %v699_v58 = vmul.f32 %v2006_v15, %v629_v12  ;;  %v2007_v46 = vmov %v2006_v15 }
  0xe4   :  { %v700_v34 = vmul.f32 %v2007_v46, %v630_v13  ;;  %v695_v16 = vadd.f32 %v691_v47, %v659_v21  ;;  %v711_v59 = vmul.f32 %v2008_v35, %v629_v12  ;;  %v2009_v17 = vmov %v2008_v35  ;;  %v819_v46 = vpop.permute.xlu0 %818 }
  0xe5   :  { %v696_v44 = vadd.f32 %v692_v43, %v660_v22  ;;  %v712_v24 = vmul.f32 %v2009_v17, %v630_v13  ;;  %v703_v56 = vrot.slane %v699_v58, 2  ;;  %v726_v4 = vsel %vm725_vm6, %v722_v33, %v724_v23 }
  0xe6   :  { %v704_v60 = vrot.slane %v700_v34, 2  ;;  %v727_v45 = vsel %vm725_vm6, %v724_v23, %v722_v33  ;;  %v715_v25 = vrot.slane %v711_v59, 2  ;;  %v2010_v54 = vstv %s1932_s7 }
  0xe7   :  { %v716_v26 = vrot.slane %v712_v24, 2  ;;  %v730_v6 = vmul.f32 %v2010_v54, %v726_v4  ;;  %v2011_v36 = vmov %v2010_v54  ;;  %v707_v12 = vadd.f32 %v703_v56, %v671_v41 }
  0xe8   :  { %v731_v7 = vmul.f32 %v2011_v36, %v727_v45  ;;  %v708_v13 = vadd.f32 %v704_v60, %v672_v32  ;;  %v2012_v53 = vstv %s1933_s4  ;;  %v719_v48 = vadd.f32 %v715_v25, %v683_v5 }
  0xe9   :  { %v736_v63 = vmul.f32 %v2012_v53, %v726_v4  ;;  %v2013_v0 = vmov %v2012_v53  ;;  %v720_v1 = vadd.f32 %v716_v26, %v684_v42  ;;  %v732_v37 = vadd.f32 %v730_v6, %v695_v16  ;;  %v821_v42 = vpop.permute.xlu1 %820 }
  0xea   :  { %v737_v9 = vmul.f32 %v2013_v0, %v727_v45  ;;  %v733_v27 = vadd.f32 %v731_v7, %v696_v44  ;;  %v2014_v40 = vstv %s1328_s24  ;;  %v2016_v19 = vstv %s1934_s30  ;;  %s2028_s24 = sld [smem:[#allocation46_spill]]  ;;  %s2032_s30 = sld [smem:[#allocation48_spill]] }
  0xeb   :  { %v738_v18 = vadd.f32 %v736_v63, %v707_v12  ;;  %v742_v61 = vmul.f32 %v2014_v40, %v726_v4  ;;  %v2015_v49 = vmov %v2014_v40  ;;  %v748_v2 = vmul.f32 %v2016_v19, %v726_v4 }
  0xec   :  { %v739_v28 = vadd.f32 %v737_v9, %v708_v13  ;;  %v743_v10 = vmul.f32 %v2015_v49, %v727_v45  ;;  %v2017_v39 = vmov %v2016_v19  ;;  %v2018_v62 = vstv %s1935_s2  ;;  %s1718_s2 = sld [smem:[#allocation2 + $0x35]] }
  0xed   :  { %v749_v38 = vmul.f32 %v2017_v39, %v727_v45  ;;  %v760_v11 = vmul.f32 %v2018_v62, %v726_v4  ;;  %v2019_v51 = vmov %v2018_v62  ;;  %v744_v14 = vadd.f32 %v742_v61, %v719_v48 }
  0xee   :  { %v761_v29 = vmul.f32 %v2019_v51, %v727_v45  ;;  %v745_v55 = vadd.f32 %v743_v10, %v720_v1  ;;  %v2020_v30 = vstv %s1936_s28  ;;  %v752_v31 = vrot.slane %v748_v2, 1  ;;  %s2029_s28 = sld [smem:[#allocation47_spill]] }
  0xef   :  { %v772_v20 = vmul.f32 %v2020_v30, %v726_v4  ;;  %v2021_v57 = vmov %v2020_v30  ;;  %v753_v21 = vrot.slane %v749_v38, 1  ;;  %v764_v22 = vrot.slane %v760_v11, 1 }
  0xf0   :  { %v773_v8 = vmul.f32 %v2021_v57, %v727_v45  ;;  %v765_v52 = vrot.slane %v761_v29, 1  ;;  %v2022_v32 = vstv %s1937_s10  ;;  %v756_v33 = vadd.f32 %v752_v31, %v732_v37 }
  0xf1   :  { %v776_v3 = vrot.slane %v772_v20, 1  ;;  %v784_v47 = vmul.f32 %v2022_v32, %v726_v4  ;;  %v2023_v43 = vmov %v2022_v32  ;;  %v757_v5 = vadd.f32 %v753_v21, %v733_v27 }
  0xf2   :  { %v777_v41 = vrot.slane %v773_v8, 1  ;;  %v785_v23 = vmul.f32 %v2023_v43, %v727_v45  ;;  %v868_v15 = vstv %s1688_s17  ;;  %v880_v58 = vstv %s1690_s20 }
  0xf3   :  { %v768_v34 = vadd.f32 %v764_v22, %v738_v18  ;;  %v769_v16 = vadd.f32 %v765_v52, %v739_v28  ;;  %v788_v44 = vrot.slane %v784_v47, 2  ;;  %v2024_v59 = vstv %s1938_s11 }
  0xf4   :  { %v789_v35 = vrot.slane %v785_v23, 2  ;;  %v796_v17 = vmul.f32 %v2024_v59, %v726_v4  ;;  %v2025_v24 = vmov %v2024_v59  ;;  %v2026_v60 = vstv %s1354_s5 }
  0xf5   :  { %v797_v56 = vmul.f32 %v2025_v24, %v727_v45  ;;  %v808_v25 = vmul.f32 %v2026_v60, %v726_v4  ;;  %v2027_v26 = vmov %v2026_v60  ;;  %v780_v6 = vadd.f32 %v776_v3, %v744_v14 }
  0xf6   :  { %v809_v54 = vmul.f32 %v2027_v26, %v727_v45  ;;  %v781_v36 = vadd.f32 %v777_v41, %v745_v55  ;;  %v823_v7 = vsel %vm822_vm7, %v819_v46, %v821_v42  ;;  %v824_v12 = vsel %vm822_vm7, %v821_v42, %v819_v46 }
  0xf7   :  { %v792_v13 = vadd.f32 %v788_v44, %v756_v33  ;;  %v793_v53 = vadd.f32 %v789_v35, %v757_v5  ;;  %v800_v63 = vrot.slane %v796_v17, 2  ;;  %v801_v4 = vrot.slane %v797_v56, 2 }
  0xf8   :  { %v812_v45 = vrot.slane %v808_v25, 2  ;;  %v813_v0 = vrot.slane %v809_v54, 2  ;;  %v2030_v9 = vstv %s1356_s25  ;;  %v2033_v18 = vstv %s1362_s6  ;;  %s2041_s6 = sld [smem:[#allocation61_spill]] }
  0xf9   :  { %v827_v48 = vmul.f32 %v2030_v9, %v823_v7  ;;  %v2031_v1 = vmov %v2030_v9  ;;  %v804_v50 = vadd.f32 %v800_v63, %v768_v34  ;;  %v805_v27 = vadd.f32 %v801_v4, %v769_v16 }
  0xfa   :  { %v828_v37 = vmul.f32 %v2031_v1, %v824_v12  ;;  %v833_v28 = vmul.f32 %v2033_v18, %v823_v7  ;;  %v2034_v40 = vmov %v2033_v18  ;;  %v816_v49 = vadd.f32 %v812_v45, %v780_v6 }
  0xfb   :  { %v834_v61 = vmul.f32 %v2034_v40, %v824_v12  ;;  %v817_v10 = vadd.f32 %v813_v0, %v781_v36  ;;  %v2035_v19 = vstv %s2028_s24  ;;  %v892_v62 = vstv %s1718_s2 }
  0xfc   :  { %v839_v2 = vmul.f32 %v2035_v19, %v823_v7  ;;  %v2036_v39 = vmov %v2035_v19  ;;  %v904_v11 = vstv %s1720_s21  ;;  %v2037_v51 = vstv %s2029_s28 }
  0xfd   :  { %v840_v38 = vmul.f32 %v2036_v39, %v824_v12  ;;  %v845_v29 = vmul.f32 %v2037_v51, %v823_v7  ;;  %v2038_v14 = vmov %v2037_v51  ;;  %v829_v30 = vadd.f32 %v827_v48, %v792_v13 }
  0xfe   :  { %v846_v55 = vmul.f32 %v2038_v14, %v824_v12  ;;  %v830_v20 = vadd.f32 %v828_v37, %v793_v53  ;;  %v2039_v57 = vstv %s2032_s30  ;;  %v835_v22 = vadd.f32 %v833_v28, %v804_v50 }
  0xff   :  { %v857_v8 = vmul.f32 %v2039_v57, %v823_v7  ;;  %v2040_v31 = vmov %v2039_v57  ;;  %v836_v52 = vadd.f32 %v834_v61, %v805_v27  ;;  %v869_v3 = vmul.f32 %v868_v15, %v823_v7 }
 0x100   :  { %v858_v21 = vmul.f32 %v2040_v31, %v824_v12  ;;  %v870_v41 = vmul.f32 %v868_v15, %v824_v12  ;;  %v841_v32 = vadd.f32 %v839_v2, %v816_v49  ;;  %v842_v47 = vadd.f32 %v840_v38, %v817_v10 }
 0x101   :  { %v861_v43 = vrot.slane %v857_v8, 1  ;;  %v849_v33 = vrot.slane %v845_v29, 1  ;;  %v850_v5 = vrot.slane %v846_v55, 1  ;;  %v873_v42 = vrot.slane %v869_v3, 1 }
 0x102   :  { %v862_v23 = vrot.slane %v858_v21, 1  ;;  %v874_v46 = vrot.slane %v870_v41, 1  ;;  %v881_v34 = vmul.f32 %v880_v58, %v823_v7  ;;  %v882_v16 = vmul.f32 %v880_v58, %v824_v12 }
 0x103   :  { %v865_v44 = vadd.f32 %v861_v43, %v835_v22  ;;  %v893_v59 = vmul.f32 %v892_v62, %v823_v7  ;;  %v894_v17 = vmul.f32 %v892_v62, %v824_v12  ;;  %v877_v24 = vadd.f32 %v873_v42, %v841_v32 }
 0x104   :  { %v866_v35 = vadd.f32 %v862_v23, %v836_v52  ;;  %v878_v56 = vadd.f32 %v874_v46, %v842_v47  ;;  %v905_v60 = vmul.f32 %v904_v11, %v823_v7  ;;  %v906_v25 = vmul.f32 %v904_v11, %v824_v12 }
 0x105   :  { %v853_v26 = vadd.f32 %v849_v33, %v829_v30  ;;  %v854_v15 = vadd.f32 %v850_v5, %v830_v20  ;;  %v897_v54 = vrot.slane %v893_v59, 2  ;;  %v898_v6 = vrot.slane %v894_v17, 2 }
 0x106   :  { %v909_v36 = vrot.slane %v905_v60, 2  ;;  %v910_v13 = vrot.slane %v906_v25, 2  ;;  %v885_v53 = vrot.slane %v881_v34, 2  ;;  %v886_v63 = vrot.slane %v882_v16, 2 }
 0x107   :  { %v901_v4 = vadd.f32 %v897_v54, %v865_v44  ;;  %v902_v45 = vadd.f32 %v898_v6, %v866_v35 }
 0x108   :  { %v913_v58 = vadd.f32 %v909_v36, %v877_v24  ;;  %v914_v0 = vadd.f32 %v910_v13, %v878_v56  ;;  %v889_v9 = vadd.f32 %v885_v53, %v853_v26  ;;  %v890_v48 = vadd.f32 %v886_v63, %v854_v15 }
 0x109   :  { %v917_v1 = vrot.slane %v901_v4, 7  ;;  %v918_v37 = vrot.slane %v902_v45, 7 }
 0x10a   :  { %v923_v7 = vrot.slane %v913_v58, 6  ;;  %v924_v12 = vrot.slane %v914_v0, 6 }
 0x10b   :  { %v928_v50 = vsel %vm927_vm8, %v889_v9, %v917_v1  ;;  %v929_v27 = vsel %vm927_vm8, %v890_v48, %v918_v37 }
 0x10c   :  { %v931_v18 = vsel %vm930_vm9, %v928_v50, %v923_v7  ;;  %v932_v28 = vsel %vm930_vm9, %v929_v27, %v924_v12 }
 0x10d   :  { %v934_v40 = vsel %vm933_vm10, %v931_v18, %v889_v9  ;;  %v935_v61 = vsel %vm933_vm10, %v932_v28, %v890_v48 }
 0x10e   :  { %v937_v49 = vsel %vm936_vm11, %v934_v40, %v917_v1  ;;  %v938_v10 = vsel %vm936_vm11, %v935_v61, %v918_v37 }
 0x10f   :  { %v940_v19 = vsel %vm939_vm12, %v937_v49, %v923_v7  ;;  %v941_v2 = vsel %vm939_vm12, %v938_v10, %v924_v12 }
 0x110   :  { %942 = vst [vmem:[%s2041_s6] sm:$0x3f] %v940_v19  ;;  %943 = vst [vmem:[%s2041_s6 + $0x8] sm:$0x3f] %v941_v2 }
 0x111   :  { %948 = vsyncpa [#allocation3], 1 }
 0x112   :  { %949 = vsyncpa [#allocation5], 1 }

</bundles_post_ra>
